<compile_context>
chip_gen: v5e
topology: v5e:2x2
jax: 0.10.0
libtpu: 0.0.40
codegen_flags: <defaults>
</compile_context>

<pallas_src>
import math
import functools
import numpy as np
import jax
import jax.numpy as jnp
from jax import lax
from jax.experimental import pallas as pl
from jax.experimental.pallas import tpu as pltpu

NEG_SLOPE = 0.2
INV_SQRT2 = 1.0 / math.sqrt(2.0)


def _leaky(x):
    return jnp.where(x > 0, x, NEG_SLOPE * x)


def _down_conv_block_kernel(W, TH, T,
                            x_ref, add1_ref, b2_ref, colmask_ref,
                            w1_ref, w2_ref, wskip_ref,
                            out_ref):
    # Static region sizes (lanes), all whole rows of width W:
    LO = TH * W              # output tile:          rows [r0,       r0+TH)
    LM = (TH + 4) * W        # conv1-output region:  rows [r0-2,     r0+TH+2)
    LE = (TH + 8) * W        # activation region:    rows [r0-4,     r0+TH+4)
    t = pl.program_id(1)

    base = t * LO
    if LO % 128 == 0:
        base = pl.multiple_of(base, 128)   # lane-aligned window start

    # Raw-input window for this tile.  The wrapper zero-padded 4 rows top/bottom,
    # so the slice is always in-bounds and the padded rows are exact zeros.
    x_win = x_ref[0, :, pl.ds(base, LE)]                     # (C_in, LE) f32
    a_ext = _leaky(x_win)                                    # LeakyReLU(0) == 0

    # Column-validity masks, computed ONCE and reused by all dx = +-1 taps.
    mL = colmask_ref[0:1, :] > 0.5                           # col >= 1     (dx = -1)
    mR = colmask_ref[1:2, :] > 0.5                           # col <= W - 2 (dx = +1)

    def conv3x3(src, w_ref, out_len):
        # 3x3 "SAME" conv as 9 accumulated MXU matmuls over shifted, column-masked
        # taps of an in-register value (no im2col buffer, no scratch stores).
        # `src` has a 2-row margin around its out_len region, so every shifted
        # tap is a static in-bounds slice:  start = 2W + dy*W + dx  in [W-1, 3W+1].
        c_out = w_ref.shape[1]
        acc = jnp.zeros((c_out, out_len), jnp.float32)
        for k in range(9):
            dy, dx = k // 3 - 1, k % 3 - 1
            start = 2 * W + dy * W + dx
            tap = src[:, start:start + out_len]              # f32 (C, out_len)
            if dx == -1:
                tap = jnp.where(mL[:, :out_len], tap, 0.0)   # select semantics
            elif dx == 1:
                tap = jnp.where(mR[:, :out_len], tap, 0.0)
            acc = acc + jnp.dot(w_ref[k], tap.astype(jnp.bfloat16),
                                preferred_element_type=jnp.float32)
        return acc

    # ---- conv1 over the haloed region, + (conv1 bias + dense_t1(t_emb)), LeakyReLU.
    h = conv3x3(a_ext, w1_ref, LM) + add1_ref[0]             # (C_out, LM)
    h = _leaky(h)

    # Zero h rows that lie outside the image: they are conv2's "SAME" zero-padding
    # rows.  With TH >= 2 only the first / last spatial tile has such rows.
    lane = lax.broadcasted_iota(jnp.int32, (1, LM), 1)
    oob = jnp.logical_or(jnp.logical_and(t == 0, lane < 2 * W),
                         jnp.logical_and(t == T - 1, lane >= LM - 2 * W))
    h = jnp.where(oob, 0.0, h)

    # ---- conv2 over the output tile (+ bias).
    acc2 = conv3x3(h, w2_ref, LO) + b2_ref[...]

    # ---- skip: 1x1 conv (no bias) on the raw (un-activated) input of this tile.
    x_tile = x_win[:, 4 * W:4 * W + LO]                      # output rows of x
    skip = jnp.dot(wskip_ref[...], x_tile.astype(jnp.bfloat16),
                   preferred_element_type=jnp.float32)

    out_ref[0] = ((acc2 + skip) * INV_SQRT2).astype(out_ref.dtype)


def _pick_tile_rows(H, W):
    """Rows per spatial tile: TH >= 2, TH | H, TH*W % 128 == 0 (lane-dense output),
    and >= 2 tiles when possible; prefer ~>=512-lane tiles at larger sizes."""
    cands = [th for th in range(2, H) if H % th == 0 and (th * W) % 128 == 0]
    if not cands:
        return H
    big = [th for th in cands if th * W >= 512]
    return min(big) if big else max(cands)


def down_conv_block(x_nchw, t_emb, params):
    """x: (B, C_in, H, W) f32, t_emb: (B, T_dim) f32 -> (B, C_out, H, W) f32."""
    B, C_in, H, W = x_nchw.shape
    C_out = params["w1"].shape[0]
    N = H * W

    TH = _pick_tile_rows(H, W)
    T = H // TH
    LM = (TH + 4) * W

    # Zero-pad 4 rows top/bottom (covers both convs' halos and the slice margins),
    # then flatten space onto the lane axis.  No transposes: NCHW throughout.
    x_pad = jnp.pad(x_nchw, ((0, 0), (0, 0), (4, 4), (0, 0)))
    x_flat = x_pad.reshape(B, C_in, (H + 8) * W).astype(jnp.float32)

    # Fold the tiny time-embedding dense + conv1 bias into one per-batch vector
    # (f32, off the per-tile critical path).
    add1 = (t_emb.astype(jnp.float32) @ params["wt"].T.astype(jnp.float32)
            + params["bt"].astype(jnp.float32) + params["b1"].astype(jnp.float32))
    add1 = add1[:, :, None]                                        # (B, C_out, 1)
    b2 = params["b2"].reshape(C_out, 1).astype(jnp.float32)

    # Column-validity masks (precomputed once; resident across the whole grid).
    col = np.arange(LM, dtype=np.int32) % W
    colmask = jnp.asarray(np.stack([(col >= 1), (col <= W - 2)]).astype(np.float32))

    # 3x3 weights as 9 per-tap (C_out, C) matrices; bf16 MXU operands.
    def conv_w_taps(w_oihw):
        o, i = w_oihw.shape[0], w_oihw.shape[1]
        return jnp.transpose(w_oihw, (2, 3, 0, 1)).reshape(9, o, i).astype(jnp.bfloat16)

    w1t = conv_w_taps(params["w1"])                                # (9, C_out, C_in)
    w2t = conv_w_taps(params["w2"])                                # (9, C_out, C_out)
    wskip = params["wskip"][:, :, 0, 0].astype(jnp.bfloat16)       # (C_out, C_in)

    kernel = functools.partial(_down_conv_block_kernel, W, TH, T)

    out_flat = pl.pallas_call(
        kernel,
        out_shape=jax.ShapeDtypeStruct((B, C_out, N), jnp.float32),
        grid=(B, T),
        in_specs=[
            pl.BlockSpec((1, C_in, (H + 8) * W), lambda b, t: (b, 0, 0)),  # x (resident per batch)
            pl.BlockSpec((1, C_out, 1), lambda b, t: (b, 0, 0)),           # b1 + dense_t1(t_emb)
            pl.BlockSpec((C_out, 1), lambda b, t: (0, 0)),                 # b2
            pl.BlockSpec((2, LM), lambda b, t: (0, 0)),                    # column masks
            pl.BlockSpec((9, C_out, C_in), lambda b, t: (0, 0, 0)),        # conv1 taps
            pl.BlockSpec((9, C_out, C_out), lambda b, t: (0, 0, 0)),       # conv2 taps
            pl.BlockSpec((C_out, C_in), lambda b, t: (0, 0)),              # skip 1x1
        ],
        out_specs=pl.BlockSpec((1, C_out, TH * W), lambda b, t: (b, 0, t)),
        compiler_params=pltpu.CompilerParams(
            dimension_semantics=("parallel", "parallel"),
            vmem_limit_bytes=64 * 1024 * 1024),
    )(x_flat, add1, b2, colmask, w1t, w2t, wskip)

    return out_flat.reshape(B, C_out, H, W)


def init_params(key, C_in, C_out, T_dim):
    """Deterministic synthetic parameters with PyTorch-native shapes."""
    ks = jax.random.split(key, 7)
    return dict(
        w1=jax.random.normal(ks[0], (C_out, C_in, 3, 3), jnp.float32) * 0.1,   # OIHW
        w2=jax.random.normal(ks[1], (C_out, C_out, 3, 3), jnp.float32) * 0.1,  # OIHW
        wskip=jax.random.normal(ks[2], (C_out, C_in, 1, 1), jnp.float32) * 0.1,
        wt=jax.random.normal(ks[3], (C_out, T_dim), jnp.float32) * 0.1,        # (out, in)
        b1=jax.random.normal(ks[4], (C_out,), jnp.float32) * 0.1,
        b2=jax.random.normal(ks[5], (C_out,), jnp.float32) * 0.1,
        bt=jax.random.normal(ks[6], (C_out,), jnp.float32) * 0.1,
    )


def reference(x, t_emb, p):
    """Pure-JAX NCHW reference (f32, highest precision) with the raw parameters."""
    dn = ("NCHW", "OIHW", "NCHW")

    def conv(inp, w):
        return lax.conv_general_dilated(inp, w, (1, 1), "SAME",
                                        dimension_numbers=dn,
                                        precision=lax.Precision.HIGHEST)

    a = jnp.where(x > 0, x, NEG_SLOPE * x)
    h = conv(a, p["w1"]) + p["b1"][None, :, None, None]
    tproj = t_emb @ p["wt"].T + p["bt"]
    h = h + tproj[:, :, None, None]
    h = jnp.where(h > 0, h, NEG_SLOPE * h)
    h2 = conv(h, p["w2"]) + p["b2"][None, :, None, None]
    skip = conv(x, p["wskip"])
    return (h2 + skip) * INV_SQRT2


if __name__ == "__main__":
    key = jax.random.PRNGKey(0)
    k_x, k_t, k_p = jax.random.split(key, 3)
    B, C_IN, C_OUT, H, W, T_DIM = 2, 4, 8, 16, 16, 32

    x = jax.random.normal(k_x, (B, C_IN, H, W), jnp.float32)
    t_emb = jax.random.normal(k_t, (B, T_DIM), jnp.float32)
    params = init_params(k_p, C_IN, C_OUT, T_DIM)

    out = jax.block_until_ready(down_conv_block(x, t_emb, params))
    assert out.shape == (B, C_OUT, H, W)

    ref = reference(x, t_emb, params)
    # bf16 MXU operands (f32 accumulation) -> compare at a bf16-level tolerance.
    np.testing.assert_allclose(np.asarray(out), np.asarray(ref), rtol=2e-2, atol=2e-2)

    print("KERNEL_OK")
</pallas_src>

<mosaic_0001>
module attributes {stable_mosaic.version = 11 : i64} {
  func.func @_down_conv_block_kernel(%arg0: i32, %arg1: i32, %arg2: memref<1x4x384xf32, #tpu.memory_space<vmem>>, %arg3: memref<1x8x1xf32, #tpu.memory_space<vmem>>, %arg4: memref<8x1xf32, #tpu.memory_space<vmem>>, %arg5: memref<2x192xf32, #tpu.memory_space<vmem>>, %arg6: memref<9x8x4xbf16, #tpu.memory_space<vmem>>, %arg7: memref<9x8x8xbf16, #tpu.memory_space<vmem>>, %arg8: memref<8x4xbf16, #tpu.memory_space<vmem>>, %arg9: memref<1x8x128xf32, #tpu.memory_space<vmem>>) attributes {dimension_semantics = [#tpu.dimension_semantics<parallel>, #tpu.dimension_semantics<parallel>], iteration_bounds = array<i64: 2, 2>, scalar_prefetch = 0 : i64, scratch_operands = 0 : i64, tpu.core_type = #tpu.core_type<tc>, window_params = [{transform_indices = @transform_0, window_bounds = array<i64: 1, 4, 384>}, {transform_indices = @transform_1, window_bounds = array<i64: 1, 8, 1>}, {pipeline_mode = #tpu.pipeline_mode<synchronous>, transform_indices = @transform_2, window_bounds = array<i64: 8, 1>}, {pipeline_mode = #tpu.pipeline_mode<synchronous>, transform_indices = @transform_3, window_bounds = array<i64: 2, 192>}, {pipeline_mode = #tpu.pipeline_mode<synchronous>, transform_indices = @transform_4, window_bounds = array<i64: 9, 8, 4>}, {pipeline_mode = #tpu.pipeline_mode<synchronous>, transform_indices = @transform_5, window_bounds = array<i64: 9, 8, 8>}, {pipeline_mode = #tpu.pipeline_mode<synchronous>, transform_indices = @transform_6, window_bounds = array<i64: 8, 4>}, {transform_indices = @transform_7, window_bounds = array<i64: 1, 8, 128>}]} {
    %c128_i32 = arith.constant 128 : i32
    %0 = arith.muli %arg1, %c128_i32 : i32
    %1 = tpu.assume_multiple %0, 128 : i32
    %c0 = arith.constant 0 : index
    %c0_0 = arith.constant 0 : index
    %2 = arith.index_cast %1 : i32 to index
    %3 = vector.load %arg2[%c0, %c0_0, %2] : memref<1x4x384xf32, #tpu.memory_space<vmem>>, vector<1x4x256xf32>
    %4 = vector.shape_cast %3 : vector<1x4x256xf32> to vector<4x256xf32>
    %cst = arith.constant 0.000000e+00 : f32
    %5 = vector.broadcast %cst : f32 to vector<4x256xf32>
    %6 = arith.cmpf ogt, %4, %5 : vector<4x256xf32>
    %cst_1 = arith.constant 2.000000e-01 : f32
    %7 = vector.broadcast %cst_1 : f32 to vector<4x256xf32>
    %8 = arith.mulf %7, %4 : vector<4x256xf32>
    %9 = arith.select %6, %4, %8 : vector<4x256xi1>, vector<4x256xf32>
    %c0_2 = arith.constant 0 : index
    %c0_3 = arith.constant 0 : index
    %10 = vector.load %arg5[%c0_2, %c0_3] : memref<2x192xf32, #tpu.memory_space<vmem>>, vector<1x192xf32>
    %cst_4 = arith.constant 5.000000e-01 : f32
    %11 = vector.broadcast %cst_4 : f32 to vector<1x192xf32>
    %12 = arith.cmpf ogt, %10, %11 : vector<1x192xf32>
    %c1 = arith.constant 1 : index
    %c0_5 = arith.constant 0 : index
    %13 = vector.load %arg5[%c1, %c0_5] : memref<2x192xf32, #tpu.memory_space<vmem>>, vector<1x192xf32>
    %cst_6 = arith.constant 5.000000e-01 : f32
    %14 = vector.broadcast %cst_6 : f32 to vector<1x192xf32>
    %15 = arith.cmpf ogt, %13, %14 : vector<1x192xf32>
    %cst_7 = arith.constant 0.000000e+00 : f32
    %16 = vector.broadcast %cst_7 : f32 to vector<8x192xf32>
    %17 = vector.extract_strided_slice %9 {offsets = [0, 15], sizes = [4, 192], strides = [1, 1]} : vector<4x256xf32> to vector<4x192xf32>
    %cst_8 = arith.constant 0.000000e+00 : f32
    %18 = vector.shape_cast %12 : vector<1x192xi1> to vector<1x192xi1>
    %19 = vector.broadcast %18 : vector<1x192xi1> to vector<4x192xi1>
    %20 = vector.broadcast %cst_8 : f32 to vector<4x192xf32>
    %21 = arith.select %19, %17, %20 : vector<4x192xi1>, vector<4x192xf32>
    %c0_9 = arith.constant 0 : index
    %c0_10 = arith.constant 0 : index
    %c0_11 = arith.constant 0 : index
    %22 = vector.load %arg6[%c0_9, %c0_10, %c0_11] : memref<9x8x4xbf16, #tpu.memory_space<vmem>>, vector<1x8x4xbf16>
    %23 = vector.shape_cast %22 : vector<1x8x4xbf16> to vector<8x4xbf16>
    %24 = arith.truncf %21 : vector<4x192xf32> to vector<4x192xbf16>
    %cst_12 = arith.constant dense<0.000000e+00> : vector<8x192xf32>
    %25 = tpu.matmul %23, %24, %cst_12 {dimension_numbers = #tpu.dot_dimension_numbers<[1], [0], [0], [1], [0, 0, 1, 1], [], []>} : vector<8x4xbf16>, vector<4x192xbf16>, vector<8x192xf32> -> vector<8x192xf32>
    %26 = arith.addf %16, %25 : vector<8x192xf32>
    %27 = vector.extract_strided_slice %9 {offsets = [0, 16], sizes = [4, 192], strides = [1, 1]} : vector<4x256xf32> to vector<4x192xf32>
    %c1_13 = arith.constant 1 : index
    %c0_14 = arith.constant 0 : index
    %c0_15 = arith.constant 0 : index
    %28 = vector.load %arg6[%c1_13, %c0_14, %c0_15] : memref<9x8x4xbf16, #tpu.memory_space<vmem>>, vector<1x8x4xbf16>
    %29 = vector.shape_cast %28 : vector<1x8x4xbf16> to vector<8x4xbf16>
    %30 = arith.truncf %27 : vector<4x192xf32> to vector<4x192xbf16>
    %cst_16 = arith.constant dense<0.000000e+00> : vector<8x192xf32>
    %31 = tpu.matmul %29, %30, %cst_16 {dimension_numbers = #tpu.dot_dimension_numbers<[1], [0], [0], [1], [0, 0, 1, 1], [], []>} : vector<8x4xbf16>, vector<4x192xbf16>, vector<8x192xf32> -> vector<8x192xf32>
    %32 = arith.addf %26, %31 : vector<8x192xf32>
    %33 = vector.extract_strided_slice %9 {offsets = [0, 17], sizes = [4, 192], strides = [1, 1]} : vector<4x256xf32> to vector<4x192xf32>
    %cst_17 = arith.constant 0.000000e+00 : f32
    %34 = vector.shape_cast %15 : vector<1x192xi1> to vector<1x192xi1>
    %35 = vector.broadcast %34 : vector<1x192xi1> to vector<4x192xi1>
    %36 = vector.broadcast %cst_17 : f32 to vector<4x192xf32>
    %37 = arith.select %35, %33, %36 : vector<4x192xi1>, vector<4x192xf32>
    %c2 = arith.constant 2 : index
    %c0_18 = arith.constant 0 : index
    %c0_19 = arith.constant 0 : index
    %38 = vector.load %arg6[%c2, %c0_18, %c0_19] : memref<9x8x4xbf16, #tpu.memory_space<vmem>>, vector<1x8x4xbf16>
    %39 = vector.shape_cast %38 : vector<1x8x4xbf16> to vector<8x4xbf16>
    %40 = arith.truncf %37 : vector<4x192xf32> to vector<4x192xbf16>
    %cst_20 = arith.constant dense<0.000000e+00> : vector<8x192xf32>
    %41 = tpu.matmul %39, %40, %cst_20 {dimension_numbers = #tpu.dot_dimension_numbers<[1], [0], [0], [1], [0, 0, 1, 1], [], []>} : vector<8x4xbf16>, vector<4x192xbf16>, vector<8x192xf32> -> vector<8x192xf32>
    %42 = arith.addf %32, %41 : vector<8x192xf32>
    %43 = vector.extract_strided_slice %9 {offsets = [0, 31], sizes = [4, 192], strides = [1, 1]} : vector<4x256xf32> to vector<4x192xf32>
    %cst_21 = arith.constant 0.000000e+00 : f32
    %44 = vector.shape_cast %12 : vector<1x192xi1> to vector<1x192xi1>
    %45 = vector.broadcast %44 : vector<1x192xi1> to vector<4x192xi1>
    %46 = vector.broadcast %cst_21 : f32 to vector<4x192xf32>
    %47 = arith.select %45, %43, %46 : vector<4x192xi1>, vector<4x192xf32>
    %c3 = arith.constant 3 : index
    %c0_22 = arith.constant 0 : index
    %c0_23 = arith.constant 0 : index
    %48 = vector.load %arg6[%c3, %c0_22, %c0_23] : memref<9x8x4xbf16, #tpu.memory_space<vmem>>, vector<1x8x4xbf16>
    %49 = vector.shape_cast %48 : vector<1x8x4xbf16> to vector<8x4xbf16>
    %50 = arith.truncf %47 : vector<4x192xf32> to vector<4x192xbf16>
    %cst_24 = arith.constant dense<0.000000e+00> : vector<8x192xf32>
    %51 = tpu.matmul %49, %50, %cst_24 {dimension_numbers = #tpu.dot_dimension_numbers<[1], [0], [0], [1], [0, 0, 1, 1], [], []>} : vector<8x4xbf16>, vector<4x192xbf16>, vector<8x192xf32> -> vector<8x192xf32>
    %52 = arith.addf %42, %51 : vector<8x192xf32>
    %53 = vector.extract_strided_slice %9 {offsets = [0, 32], sizes = [4, 192], strides = [1, 1]} : vector<4x256xf32> to vector<4x192xf32>
    %c4 = arith.constant 4 : index
    %c0_25 = arith.constant 0 : index
    %c0_26 = arith.constant 0 : index
    %54 = vector.load %arg6[%c4, %c0_25, %c0_26] : memref<9x8x4xbf16, #tpu.memory_space<vmem>>, vector<1x8x4xbf16>
    %55 = vector.shape_cast %54 : vector<1x8x4xbf16> to vector<8x4xbf16>
    %56 = arith.truncf %53 : vector<4x192xf32> to vector<4x192xbf16>
    %cst_27 = arith.constant dense<0.000000e+00> : vector<8x192xf32>
    %57 = tpu.matmul %55, %56, %cst_27 {dimension_numbers = #tpu.dot_dimension_numbers<[1], [0], [0], [1], [0, 0, 1, 1], [], []>} : vector<8x4xbf16>, vector<4x192xbf16>, vector<8x192xf32> -> vector<8x192xf32>
    %58 = arith.addf %52, %57 : vector<8x192xf32>
    %59 = vector.extract_strided_slice %9 {offsets = [0, 33], sizes = [4, 192], strides = [1, 1]} : vector<4x256xf32> to vector<4x192xf32>
    %cst_28 = arith.constant 0.000000e+00 : f32
    %60 = vector.shape_cast %15 : vector<1x192xi1> to vector<1x192xi1>
    %61 = vector.broadcast %60 : vector<1x192xi1> to vector<4x192xi1>
    %62 = vector.broadcast %cst_28 : f32 to vector<4x192xf32>
    %63 = arith.select %61, %59, %62 : vector<4x192xi1>, vector<4x192xf32>
    %c5 = arith.constant 5 : index
    %c0_29 = arith.constant 0 : index
    %c0_30 = arith.constant 0 : index
    %64 = vector.load %arg6[%c5, %c0_29, %c0_30] : memref<9x8x4xbf16, #tpu.memory_space<vmem>>, vector<1x8x4xbf16>
    %65 = vector.shape_cast %64 : vector<1x8x4xbf16> to vector<8x4xbf16>
    %66 = arith.truncf %63 : vector<4x192xf32> to vector<4x192xbf16>
    %cst_31 = arith.constant dense<0.000000e+00> : vector<8x192xf32>
    %67 = tpu.matmul %65, %66, %cst_31 {dimension_numbers = #tpu.dot_dimension_numbers<[1], [0], [0], [1], [0, 0, 1, 1], [], []>} : vector<8x4xbf16>, vector<4x192xbf16>, vector<8x192xf32> -> vector<8x192xf32>
    %68 = arith.addf %58, %67 : vector<8x192xf32>
    %69 = vector.extract_strided_slice %9 {offsets = [0, 47], sizes = [4, 192], strides = [1, 1]} : vector<4x256xf32> to vector<4x192xf32>
    %cst_32 = arith.constant 0.000000e+00 : f32
    %70 = vector.shape_cast %12 : vector<1x192xi1> to vector<1x192xi1>
    %71 = vector.broadcast %70 : vector<1x192xi1> to vector<4x192xi1>
    %72 = vector.broadcast %cst_32 : f32 to vector<4x192xf32>
    %73 = arith.select %71, %69, %72 : vector<4x192xi1>, vector<4x192xf32>
    %c6 = arith.constant 6 : index
    %c0_33 = arith.constant 0 : index
    %c0_34 = arith.constant 0 : index
    %74 = vector.load %arg6[%c6, %c0_33, %c0_34] : memref<9x8x4xbf16, #tpu.memory_space<vmem>>, vector<1x8x4xbf16>
    %75 = vector.shape_cast %74 : vector<1x8x4xbf16> to vector<8x4xbf16>
    %76 = arith.truncf %73 : vector<4x192xf32> to vector<4x192xbf16>
    %cst_35 = arith.constant dense<0.000000e+00> : vector<8x192xf32>
    %77 = tpu.matmul %75, %76, %cst_35 {dimension_numbers = #tpu.dot_dimension_numbers<[1], [0], [0], [1], [0, 0, 1, 1], [], []>} : vector<8x4xbf16>, vector<4x192xbf16>, vector<8x192xf32> -> vector<8x192xf32>
    %78 = arith.addf %68, %77 : vector<8x192xf32>
    %79 = vector.extract_strided_slice %9 {offsets = [0, 48], sizes = [4, 192], strides = [1, 1]} : vector<4x256xf32> to vector<4x192xf32>
    %c7 = arith.constant 7 : index
    %c0_36 = arith.constant 0 : index
    %c0_37 = arith.constant 0 : index
    %80 = vector.load %arg6[%c7, %c0_36, %c0_37] : memref<9x8x4xbf16, #tpu.memory_space<vmem>>, vector<1x8x4xbf16>
    %81 = vector.shape_cast %80 : vector<1x8x4xbf16> to vector<8x4xbf16>
    %82 = arith.truncf %79 : vector<4x192xf32> to vector<4x192xbf16>
    %cst_38 = arith.constant dense<0.000000e+00> : vector<8x192xf32>
    %83 = tpu.matmul %81, %82, %cst_38 {dimension_numbers = #tpu.dot_dimension_numbers<[1], [0], [0], [1], [0, 0, 1, 1], [], []>} : vector<8x4xbf16>, vector<4x192xbf16>, vector<8x192xf32> -> vector<8x192xf32>
    %84 = arith.addf %78, %83 : vector<8x192xf32>
    %85 = vector.extract_strided_slice %9 {offsets = [0, 49], sizes = [4, 192], strides = [1, 1]} : vector<4x256xf32> to vector<4x192xf32>
    %cst_39 = arith.constant 0.000000e+00 : f32
    %86 = vector.shape_cast %15 : vector<1x192xi1> to vector<1x192xi1>
    %87 = vector.broadcast %86 : vector<1x192xi1> to vector<4x192xi1>
    %88 = vector.broadcast %cst_39 : f32 to vector<4x192xf32>
    %89 = arith.select %87, %85, %88 : vector<4x192xi1>, vector<4x192xf32>
    %c8 = arith.constant 8 : index
    %c0_40 = arith.constant 0 : index
    %c0_41 = arith.constant 0 : index
    %90 = vector.load %arg6[%c8, %c0_40, %c0_41] : memref<9x8x4xbf16, #tpu.memory_space<vmem>>, vector<1x8x4xbf16>
    %91 = vector.shape_cast %90 : vector<1x8x4xbf16> to vector<8x4xbf16>
    %92 = arith.truncf %89 : vector<4x192xf32> to vector<4x192xbf16>
    %cst_42 = arith.constant dense<0.000000e+00> : vector<8x192xf32>
    %93 = tpu.matmul %91, %92, %cst_42 {dimension_numbers = #tpu.dot_dimension_numbers<[1], [0], [0], [1], [0, 0, 1, 1], [], []>} : vector<8x4xbf16>, vector<4x192xbf16>, vector<8x192xf32> -> vector<8x192xf32>
    %94 = arith.addf %84, %93 : vector<8x192xf32>
    %c0_43 = arith.constant 0 : index
    %c0_44 = arith.constant 0 : index
    %c0_45 = arith.constant 0 : index
    %95 = vector.load %arg3[%c0_43, %c0_44, %c0_45] : memref<1x8x1xf32, #tpu.memory_space<vmem>>, vector<1x8x1xf32>
    %96 = vector.shape_cast %95 : vector<1x8x1xf32> to vector<8x1xf32>
    %97 = vector.broadcast %96 : vector<8x1xf32> to vector<8x192xf32>
    %98 = arith.addf %94, %97 : vector<8x192xf32>
    %cst_46 = arith.constant 0.000000e+00 : f32
    %99 = vector.broadcast %cst_46 : f32 to vector<8x192xf32>
    %100 = arith.cmpf ogt, %98, %99 : vector<8x192xf32>
    %cst_47 = arith.constant 2.000000e-01 : f32
    %101 = vector.broadcast %cst_47 : f32 to vector<8x192xf32>
    %102 = arith.mulf %101, %98 : vector<8x192xf32>
    %103 = arith.select %100, %98, %102 : vector<8x192xi1>, vector<8x192xf32>
    %104 = tpu.iota {dimensions = array<i32: 1>} : vector<1x192xi32>
    %c0_i32 = arith.constant 0 : i32
    %105 = arith.cmpi eq, %arg1, %c0_i32 : i32
    %c32_i32 = arith.constant 32 : i32
    %106 = vector.broadcast %c32_i32 : i32 to vector<1x192xi32>
    %107 = arith.cmpi slt, %104, %106 : vector<1x192xi32>
    %108 = vector.broadcast %105 : i1 to vector<1x192xi1>
    %109 = arith.andi %108, %107 : vector<1x192xi1>
    %c1_i32 = arith.constant 1 : i32
    %110 = arith.cmpi eq, %arg1, %c1_i32 : i32
    %c160_i32 = arith.constant 160 : i32
    %111 = vector.broadcast %c160_i32 : i32 to vector<1x192xi32>
    %112 = arith.cmpi sge, %104, %111 : vector<1x192xi32>
    %113 = vector.broadcast %110 : i1 to vector<1x192xi1>
    %114 = arith.andi %113, %112 : vector<1x192xi1>
    %115 = arith.ori %109, %114 : vector<1x192xi1>
    %cst_48 = arith.constant 0.000000e+00 : f32
    %116 = vector.shape_cast %115 : vector<1x192xi1> to vector<1x192xi1>
    %117 = vector.broadcast %116 : vector<1x192xi1> to vector<8x192xi1>
    %118 = vector.broadcast %cst_48 : f32 to vector<8x192xf32>
    %119 = arith.select %117, %118, %103 : vector<8x192xi1>, vector<8x192xf32>
    %cst_49 = arith.constant 0.000000e+00 : f32
    %120 = vector.broadcast %cst_49 : f32 to vector<8x128xf32>
    %121 = vector.extract_strided_slice %119 {offsets = [0, 15], sizes = [8, 128], strides = [1, 1]} : vector<8x192xf32> to vector<8x128xf32>
    %122 = vector.extract_strided_slice %12 {offsets = [0, 0], sizes = [1, 128], strides = [1, 1]} : vector<1x192xi1> to vector<1x128xi1>
    %cst_50 = arith.constant 0.000000e+00 : f32
    %123 = vector.shape_cast %122 : vector<1x128xi1> to vector<1x128xi1>
    %124 = vector.broadcast %123 : vector<1x128xi1> to vector<8x128xi1>
    %125 = vector.broadcast %cst_50 : f32 to vector<8x128xf32>
    %126 = arith.select %124, %121, %125 : vector<8x128xi1>, vector<8x128xf32>
    %c0_51 = arith.constant 0 : index
    %c0_52 = arith.constant 0 : index
    %c0_53 = arith.constant 0 : index
    %127 = vector.load %arg7[%c0_51, %c0_52, %c0_53] : memref<9x8x8xbf16, #tpu.memory_space<vmem>>, vector<1x8x8xbf16>
    %128 = vector.shape_cast %127 : vector<1x8x8xbf16> to vector<8x8xbf16>
    %129 = arith.truncf %126 : vector<8x128xf32> to vector<8x128xbf16>
    %cst_54 = arith.constant dense<0.000000e+00> : vector<8x128xf32>
    %130 = tpu.matmul %128, %129, %cst_54 {dimension_numbers = #tpu.dot_dimension_numbers<[1], [0], [0], [1], [0, 0, 1, 1], [], []>} : vector<8x8xbf16>, vector<8x128xbf16>, vector<8x128xf32> -> vector<8x128xf32>
    %131 = arith.addf %120, %130 : vector<8x128xf32>
    %132 = vector.extract_strided_slice %119 {offsets = [0, 16], sizes = [8, 128], strides = [1, 1]} : vector<8x192xf32> to vector<8x128xf32>
    %c1_55 = arith.constant 1 : index
    %c0_56 = arith.constant 0 : index
    %c0_57 = arith.constant 0 : index
    %133 = vector.load %arg7[%c1_55, %c0_56, %c0_57] : memref<9x8x8xbf16, #tpu.memory_space<vmem>>, vector<1x8x8xbf16>
    %134 = vector.shape_cast %133 : vector<1x8x8xbf16> to vector<8x8xbf16>
    %135 = arith.truncf %132 : vector<8x128xf32> to vector<8x128xbf16>
    %cst_58 = arith.constant dense<0.000000e+00> : vector<8x128xf32>
    %136 = tpu.matmul %134, %135, %cst_58 {dimension_numbers = #tpu.dot_dimension_numbers<[1], [0], [0], [1], [0, 0, 1, 1], [], []>} : vector<8x8xbf16>, vector<8x128xbf16>, vector<8x128xf32> -> vector<8x128xf32>
    %137 = arith.addf %131, %136 : vector<8x128xf32>
    %138 = vector.extract_strided_slice %119 {offsets = [0, 17], sizes = [8, 128], strides = [1, 1]} : vector<8x192xf32> to vector<8x128xf32>
    %139 = vector.extract_strided_slice %15 {offsets = [0, 0], sizes = [1, 128], strides = [1, 1]} : vector<1x192xi1> to vector<1x128xi1>
    %cst_59 = arith.constant 0.000000e+00 : f32
    %140 = vector.shape_cast %139 : vector<1x128xi1> to vector<1x128xi1>
    %141 = vector.broadcast %140 : vector<1x128xi1> to vector<8x128xi1>
    %142 = vector.broadcast %cst_59 : f32 to vector<8x128xf32>
    %143 = arith.select %141, %138, %142 : vector<8x128xi1>, vector<8x128xf32>
    %c2_60 = arith.constant 2 : index
    %c0_61 = arith.constant 0 : index
    %c0_62 = arith.constant 0 : index
    %144 = vector.load %arg7[%c2_60, %c0_61, %c0_62] : memref<9x8x8xbf16, #tpu.memory_space<vmem>>, vector<1x8x8xbf16>
    %145 = vector.shape_cast %144 : vector<1x8x8xbf16> to vector<8x8xbf16>
    %146 = arith.truncf %143 : vector<8x128xf32> to vector<8x128xbf16>
    %cst_63 = arith.constant dense<0.000000e+00> : vector<8x128xf32>
    %147 = tpu.matmul %145, %146, %cst_63 {dimension_numbers = #tpu.dot_dimension_numbers<[1], [0], [0], [1], [0, 0, 1, 1], [], []>} : vector<8x8xbf16>, vector<8x128xbf16>, vector<8x128xf32> -> vector<8x128xf32>
    %148 = arith.addf %137, %147 : vector<8x128xf32>
    %149 = vector.extract_strided_slice %119 {offsets = [0, 31], sizes = [8, 128], strides = [1, 1]} : vector<8x192xf32> to vector<8x128xf32>
    %150 = vector.extract_strided_slice %12 {offsets = [0, 0], sizes = [1, 128], strides = [1, 1]} : vector<1x192xi1> to vector<1x128xi1>
    %cst_64 = arith.constant 0.000000e+00 : f32
    %151 = vector.shape_cast %150 : vector<1x128xi1> to vector<1x128xi1>
    %152 = vector.broadcast %151 : vector<1x128xi1> to vector<8x128xi1>
    %153 = vector.broadcast %cst_64 : f32 to vector<8x128xf32>
    %154 = arith.select %152, %149, %153 : vector<8x128xi1>, vector<8x128xf32>
    %c3_65 = arith.constant 3 : index
    %c0_66 = arith.constant 0 : index
    %c0_67 = arith.constant 0 : index
    %155 = vector.load %arg7[%c3_65, %c0_66, %c0_67] : memref<9x8x8xbf16, #tpu.memory_space<vmem>>, vector<1x8x8xbf16>
    %156 = vector.shape_cast %155 : vector<1x8x8xbf16> to vector<8x8xbf16>
    %157 = arith.truncf %154 : vector<8x128xf32> to vector<8x128xbf16>
    %cst_68 = arith.constant dense<0.000000e+00> : vector<8x128xf32>
    %158 = tpu.matmul %156, %157, %cst_68 {dimension_numbers = #tpu.dot_dimension_numbers<[1], [0], [0], [1], [0, 0, 1, 1], [], []>} : vector<8x8xbf16>, vector<8x128xbf16>, vector<8x128xf32> -> vector<8x128xf32>
    %159 = arith.addf %148, %158 : vector<8x128xf32>
    %160 = vector.extract_strided_slice %119 {offsets = [0, 32], sizes = [8, 128], strides = [1, 1]} : vector<8x192xf32> to vector<8x128xf32>
    %c4_69 = arith.constant 4 : index
    %c0_70 = arith.constant 0 : index
    %c0_71 = arith.constant 0 : index
    %161 = vector.load %arg7[%c4_69, %c0_70, %c0_71] : memref<9x8x8xbf16, #tpu.memory_space<vmem>>, vector<1x8x8xbf16>
    %162 = vector.shape_cast %161 : vector<1x8x8xbf16> to vector<8x8xbf16>
    %163 = arith.truncf %160 : vector<8x128xf32> to vector<8x128xbf16>
    %cst_72 = arith.constant dense<0.000000e+00> : vector<8x128xf32>
    %164 = tpu.matmul %162, %163, %cst_72 {dimension_numbers = #tpu.dot_dimension_numbers<[1], [0], [0], [1], [0, 0, 1, 1], [], []>} : vector<8x8xbf16>, vector<8x128xbf16>, vector<8x128xf32> -> vector<8x128xf32>
    %165 = arith.addf %159, %164 : vector<8x128xf32>
    %166 = vector.extract_strided_slice %119 {offsets = [0, 33], sizes = [8, 128], strides = [1, 1]} : vector<8x192xf32> to vector<8x128xf32>
    %167 = vector.extract_strided_slice %15 {offsets = [0, 0], sizes = [1, 128], strides = [1, 1]} : vector<1x192xi1> to vector<1x128xi1>
    %cst_73 = arith.constant 0.000000e+00 : f32
    %168 = vector.shape_cast %167 : vector<1x128xi1> to vector<1x128xi1>
    %169 = vector.broadcast %168 : vector<1x128xi1> to vector<8x128xi1>
    %170 = vector.broadcast %cst_73 : f32 to vector<8x128xf32>
    %171 = arith.select %169, %166, %170 : vector<8x128xi1>, vector<8x128xf32>
    %c5_74 = arith.constant 5 : index
    %c0_75 = arith.constant 0 : index
    %c0_76 = arith.constant 0 : index
    %172 = vector.load %arg7[%c5_74, %c0_75, %c0_76] : memref<9x8x8xbf16, #tpu.memory_space<vmem>>, vector<1x8x8xbf16>
    %173 = vector.shape_cast %172 : vector<1x8x8xbf16> to vector<8x8xbf16>
    %174 = arith.truncf %171 : vector<8x128xf32> to vector<8x128xbf16>
    %cst_77 = arith.constant dense<0.000000e+00> : vector<8x128xf32>
    %175 = tpu.matmul %173, %174, %cst_77 {dimension_numbers = #tpu.dot_dimension_numbers<[1], [0], [0], [1], [0, 0, 1, 1], [], []>} : vector<8x8xbf16>, vector<8x128xbf16>, vector<8x128xf32> -> vector<8x128xf32>
    %176 = arith.addf %165, %175 : vector<8x128xf32>
    %177 = vector.extract_strided_slice %119 {offsets = [0, 47], sizes = [8, 128], strides = [1, 1]} : vector<8x192xf32> to vector<8x128xf32>
    %178 = vector.extract_strided_slice %12 {offsets = [0, 0], sizes = [1, 128], strides = [1, 1]} : vector<1x192xi1> to vector<1x128xi1>
    %cst_78 = arith.constant 0.000000e+00 : f32
    %179 = vector.shape_cast %178 : vector<1x128xi1> to vector<1x128xi1>
    %180 = vector.broadcast %179 : vector<1x128xi1> to vector<8x128xi1>
    %181 = vector.broadcast %cst_78 : f32 to vector<8x128xf32>
    %182 = arith.select %180, %177, %181 : vector<8x128xi1>, vector<8x128xf32>
    %c6_79 = arith.constant 6 : index
    %c0_80 = arith.constant 0 : index
    %c0_81 = arith.constant 0 : index
    %183 = vector.load %arg7[%c6_79, %c0_80, %c0_81] : memref<9x8x8xbf16, #tpu.memory_space<vmem>>, vector<1x8x8xbf16>
    %184 = vector.shape_cast %183 : vector<1x8x8xbf16> to vector<8x8xbf16>
    %185 = arith.truncf %182 : vector<8x128xf32> to vector<8x128xbf16>
    %cst_82 = arith.constant dense<0.000000e+00> : vector<8x128xf32>
    %186 = tpu.matmul %184, %185, %cst_82 {dimension_numbers = #tpu.dot_dimension_numbers<[1], [0], [0], [1], [0, 0, 1, 1], [], []>} : vector<8x8xbf16>, vector<8x128xbf16>, vector<8x128xf32> -> vector<8x128xf32>
    %187 = arith.addf %176, %186 : vector<8x128xf32>
    %188 = vector.extract_strided_slice %119 {offsets = [0, 48], sizes = [8, 128], strides = [1, 1]} : vector<8x192xf32> to vector<8x128xf32>
    %c7_83 = arith.constant 7 : index
    %c0_84 = arith.constant 0 : index
    %c0_85 = arith.constant 0 : index
    %189 = vector.load %arg7[%c7_83, %c0_84, %c0_85] : memref<9x8x8xbf16, #tpu.memory_space<vmem>>, vector<1x8x8xbf16>
    %190 = vector.shape_cast %189 : vector<1x8x8xbf16> to vector<8x8xbf16>
    %191 = arith.truncf %188 : vector<8x128xf32> to vector<8x128xbf16>
    %cst_86 = arith.constant dense<0.000000e+00> : vector<8x128xf32>
    %192 = tpu.matmul %190, %191, %cst_86 {dimension_numbers = #tpu.dot_dimension_numbers<[1], [0], [0], [1], [0, 0, 1, 1], [], []>} : vector<8x8xbf16>, vector<8x128xbf16>, vector<8x128xf32> -> vector<8x128xf32>
    %193 = arith.addf %187, %192 : vector<8x128xf32>
    %194 = vector.extract_strided_slice %119 {offsets = [0, 49], sizes = [8, 128], strides = [1, 1]} : vector<8x192xf32> to vector<8x128xf32>
    %195 = vector.extract_strided_slice %15 {offsets = [0, 0], sizes = [1, 128], strides = [1, 1]} : vector<1x192xi1> to vector<1x128xi1>
    %cst_87 = arith.constant 0.000000e+00 : f32
    %196 = vector.shape_cast %195 : vector<1x128xi1> to vector<1x128xi1>
    %197 = vector.broadcast %196 : vector<1x128xi1> to vector<8x128xi1>
    %198 = vector.broadcast %cst_87 : f32 to vector<8x128xf32>
    %199 = arith.select %197, %194, %198 : vector<8x128xi1>, vector<8x128xf32>
    %c8_88 = arith.constant 8 : index
    %c0_89 = arith.constant 0 : index
    %c0_90 = arith.constant 0 : index
    %200 = vector.load %arg7[%c8_88, %c0_89, %c0_90] : memref<9x8x8xbf16, #tpu.memory_space<vmem>>, vector<1x8x8xbf16>
    %201 = vector.shape_cast %200 : vector<1x8x8xbf16> to vector<8x8xbf16>
    %202 = arith.truncf %199 : vector<8x128xf32> to vector<8x128xbf16>
    %cst_91 = arith.constant dense<0.000000e+00> : vector<8x128xf32>
    %203 = tpu.matmul %201, %202, %cst_91 {dimension_numbers = #tpu.dot_dimension_numbers<[1], [0], [0], [1], [0, 0, 1, 1], [], []>} : vector<8x8xbf16>, vector<8x128xbf16>, vector<8x128xf32> -> vector<8x128xf32>
    %204 = arith.addf %193, %203 : vector<8x128xf32>
    %c0_92 = arith.constant 0 : index
    %c0_93 = arith.constant 0 : index
    %205 = vector.load %arg4[%c0_92, %c0_93] : memref<8x1xf32, #tpu.memory_space<vmem>>, vector<8x1xf32>
    %206 = vector.broadcast %205 : vector<8x1xf32> to vector<8x128xf32>
    %207 = arith.addf %204, %206 : vector<8x128xf32>
    %208 = vector.extract_strided_slice %4 {offsets = [0, 64], sizes = [4, 128], strides = [1, 1]} : vector<4x256xf32> to vector<4x128xf32>
    %c0_94 = arith.constant 0 : index
    %c0_95 = arith.constant 0 : index
    %209 = vector.load %arg8[%c0_94, %c0_95] : memref<8x4xbf16, #tpu.memory_space<vmem>>, vector<8x4xbf16>
    %210 = arith.truncf %208 : vector<4x128xf32> to vector<4x128xbf16>
    %cst_96 = arith.constant dense<0.000000e+00> : vector<8x128xf32>
    %211 = tpu.matmul %209, %210, %cst_96 {dimension_numbers = #tpu.dot_dimension_numbers<[1], [0], [0], [1], [0, 0, 1, 1], [], []>} : vector<8x4xbf16>, vector<4x128xbf16>, vector<8x128xf32> -> vector<8x128xf32>
    %212 = arith.addf %207, %211 : vector<8x128xf32>
    %cst_97 = arith.constant 0.707106769 : f32
    %213 = vector.broadcast %cst_97 : f32 to vector<8x128xf32>
    %214 = arith.mulf %212, %213 : vector<8x128xf32>
    %c0_98 = arith.constant 0 : index
    %c0_99 = arith.constant 0 : index
    %c0_100 = arith.constant 0 : index
    %215 = vector.load %arg9[%c0_98, %c0_99, %c0_100] : memref<1x8x128xf32, #tpu.memory_space<vmem>>, vector<1x8x128xf32>
    %216 = vector.shape_cast %215 : vector<1x8x128xf32> to vector<8x128xf32>
    %217 = vector.shape_cast %214 : vector<8x128xf32> to vector<1x8x128xf32>
    tpu.vector_store %arg9[%c0_98, %c0_99, %c0_100], %217 {strides = array<i32>} : memref<1x8x128xf32, #tpu.memory_space<vmem>>, vector<1x8x128xf32>,
    return
  }
  func.func @transform_0(%arg0: i32, %arg1: i32) -> (i32, i32, i32) {
    %c0_i32 = arith.constant 0 : i32
    %c0_i32_0 = arith.constant 0 : i32
    %c0_i32_1 = arith.constant 0 : i32
    return %arg0, %c0_i32, %c0_i32_0 : i32, i32, i32
  }
  func.func @transform_1(%arg0: i32, %arg1: i32) -> (i32, i32, i32) {
    %c0_i32 = arith.constant 0 : i32
    %c0_i32_0 = arith.constant 0 : i32
    %c0_i32_1 = arith.constant 0 : i32
    return %arg0, %c0_i32, %c0_i32_0 : i32, i32, i32
  }
  func.func @transform_2(%arg0: i32, %arg1: i32) -> (i32, i32) {
    %c0_i32 = arith.constant 0 : i32
    %c0_i32_0 = arith.constant 0 : i32
    %c0_i32_1 = arith.constant 0 : i32
    return %c0_i32, %c0_i32_0 : i32, i32
  }
  func.func @transform_3(%arg0: i32, %arg1: i32) -> (i32, i32) {
    %c0_i32 = arith.constant 0 : i32
    %c0_i32_0 = arith.constant 0 : i32
    %c0_i32_1 = arith.constant 0 : i32
    return %c0_i32, %c0_i32_0 : i32, i32
  }
  func.func @transform_4(%arg0: i32, %arg1: i32) -> (i32, i32, i32) {
    %c0_i32 = arith.constant 0 : i32
    %c0_i32_0 = arith.constant 0 : i32
    %c0_i32_1 = arith.constant 0 : i32
    %c0_i32_2 = arith.constant 0 : i32
    return %c0_i32, %c0_i32_0, %c0_i32_1 : i32, i32, i32
  }
  func.func @transform_5(%arg0: i32, %arg1: i32) -> (i32, i32, i32) {
    %c0_i32 = arith.constant 0 : i32
    %c0_i32_0 = arith.constant 0 : i32
    %c0_i32_1 = arith.constant 0 : i32
    %c0_i32_2 = arith.constant 0 : i32
    return %c0_i32, %c0_i32_0, %c0_i32_1 : i32, i32, i32
  }
  func.func @transform_6(%arg0: i32, %arg1: i32) -> (i32, i32) {
    %c0_i32 = arith.constant 0 : i32
    %c0_i32_0 = arith.constant 0 : i32
    %c0_i32_1 = arith.constant 0 : i32
    return %c0_i32, %c0_i32_0 : i32, i32
  }
  func.func @transform_7(%arg0: i32, %arg1: i32) -> (i32, i32, i32) {
    %c0_i32 = arith.constant 0 : i32
    %c0_i32_0 = arith.constant 0 : i32
    return %arg0, %c0_i32, %arg1 : i32, i32, i32
  }
}

</mosaic_0001>

<bundles_post_ra>
// kernel: tpu_custom_call.1
= control target key start
LH: loop header
LB: loop body
LE: loop exit
PB: predicated region body
PF: predicated region fallthrough
CT: control target
= control target key end

     0   :  { %12 = vsyncpa [#allocation3], 0  ;;  %s1972_s0 = inlined_call_operand.vmem [shape: f32[2,4,384], index: 0, kind: input, shape index: {}]   ;;  %s1973_s1 = inlined_call_operand.vmem [shape: f32[2,8,1], index: 1, kind: input, shape index: {}]   ;;  %s1974_s2 = inlined_call_operand.vmem [shape: f32[8,1], index: 2, kind: input, shape index: {}]   ;;  %s1975_s3 = inlined_call_operand.vmem [shape: f32[2,192], index: 3, kind: input, shape index: {}]   ;;  %s1976_s4 = inlined_call_operand.vmem [shape: bf16[9,8,4], index: 4, kind: input, shape index: {}]   ;;  %s1977_s5 = inlined_call_operand.vmem [shape: bf16[9,8,8], index: 5, kind: input, shape index: {}]   ;;  %s1978_s6 = inlined_call_operand.vmem [shape: bf16[8,4], index: 6, kind: input, shape index: {}]   ;;  %s1979_s7 = inlined_call_operand.hbm [shape: f32[2,8,256], index: 7, kind: output, shape index: {}]  }
   0x1   :  { %14 = vsyncpa [#allocation3 + $0x1], 0  ;;  %s1626_s24 = smov 0   ;;  %s1628_s25 = smov 0  }
   0x2   :  { %s1630_s26 = smov 0   ;;  %s1632_s27 = smov 0  }
   0x3   :  { %s1634_s28 = smov 0   ;;  %s1636_s29 = smov 0  }
   0x4   :  { %s1638_s30 = smov 0   ;;  %s1640_s8 = smov 0  }
   0x5 LB: > { %s1274_s9 = sadd.s32 4294967295, %s1573_s8   ;;  %s1275_s10 = sadd.s32 4294967294, %s1573_s8   ;;  %s1573_s8 = sphi %s1640_s8, %s20_s8   ;;  %s1569_s30 = sphi %s1638_s30, %s2026_s30   ;;  %s1565_s29 = sphi %s1636_s29, %s2025_s29   ;;  %s1561_s28 = sphi %s1634_s28, %s2024_s28   ;;  %s1557_s27 = sphi %s1632_s27, %s2023_s27   ;;  %s1553_s26 = sphi %s1630_s26, %s2022_s26   ;;  %s1549_s25 = sphi %s1628_s25, %s2021_s25   ;;  %s1545_s24 = sphi %s1626_s24, %s2020_s24  }
   0x6   : > { %s29_s11 = sadd.s32 1, %s1565_s29  ;;  %s32_s12 = sadd.s32 1, %s1569_s30 }
   0x7   : > { %p30_p0 = scmp.ge.s32.totalorder %s29_s11, 2  ;;  %p208_p1 = scmp.ne.s32.totalorder %s1553_s26, %s1549_s25 }
   0x8   : > { %p209_p2 = scmp.eq.s32.totalorder %s1274_s9, 3  ;;  %p214_p5 = scmp.ne.s32.totalorder %s1549_s25, %s1545_s24 }
   0x9   : > { %s2028_s11 = smov (%p30_p0, %s29_s11), 0  ;;  %s2030_s12 = smov (!%p30_p0, %s32_s12), %s1569_s30 }
   0xa   : > { %s194_s13 = ssub.s32 %s1565_s29, %s2028_s11  ;;  %p1677_p3 = por %p209_p2, %p208_p1 }
   0xb   : > { %p34_p4 = scmp.ge.s32.totalorder %s2030_s12, 2  ;;  %p215_p6 = scmp.eq.s32.totalorder %s1275_s10, 3 }
   0xc   : > { %p1278_p7 = scmp.ge.s32.totalorder %s1573_s8, 1  ;;  %p263_p9 = scmp.lt.s32.totalorder %s1573_s8, 5 }
   0xd   : > { %s2032_s12 = smov (%p34_p4, %s2030_s12), 0  ;;  %p1686_p8 = por %p215_p6, %p214_p5 }
   0xe   : > { %1997 = sst [smem:[#allocation5_spill]] %s2032_s12  ;;  %s193_s16 = ssub.s32 %s1569_s30, %s2032_s12 }
   0xf   : > { %s198_s17 = sadd.s32 1, %s1553_s26  ;;  %s195_s18 = sor.u32 %s194_s13, %s193_s16 }
  0x10   : > { %p264_p10 = pnand %p1278_p7, %p263_p9  ;;  %p196_p11 = scmp.eq.s32.totalorder %s195_s18, 0 }
  0x11   : > { %p299_p12 = scmp.lt.s32.totalorder (!%p264_p10), %s1561_s28, 1  ;;  %s1282_s20 = sshll.u32 (!%p264_p10), %s1557_s27, 7 }
  0x12   : > { %s1695_s19 = scalar_select %p196_p11, %s1553_s26, %s198_s17  }
  0x13   : > { %267 = sbr.rel (%p264_p10) target bundleno = 683 (0x2ab), region = 48  ;;  %s310_s21 = sshra.s32 (!%p264_p10), %s1282_s20, 7 }
  0x14   : > { %s1283_s9 = sshll.u32 (!%p264_p10), %s310_s21, 2  ;;  %s1575_s17 = smov (!%p264_p10), 113  }
  0x15   : > { %s1989_s18 = smov (!%p264_p10), 112   ;;  %s1987_s12 = smov (!%p264_p10), 111  }
  0x16   : > { %s1988_s20 = smov (!%p264_p10), 97   ;;  %s1985_s21 = smov (!%p264_p10), 96  }
  0x17   : > { %s1983_s10 = smov (!%p264_p10), 80   ;;  %p842_p13 = scmp.eq.s32.totalorder (!%p264_p10), %s1557_s27, 1 }
  0x18   : > { %s1700_s22 = scalar_select %p299_p12, %s1561_s28, 1  ;;  %v1584_v33 = vmov 0   ;;  %v318_v34 = vld [vmem:[%s1975_s3] ss:$2 sm:$0x3]  ;;  %vm336_vm3 = vcmask 924672  }
  0x19   : > { %1447 = vset.pattern.permute.xlu0 %v1584_v33  ;;  %1478 = vset.pattern.permute.xlu1 %v1584_v33  ;;  %vm319_vm1 = vcmp.gt.f32.partialorder %v318_v34, 0.5  ;;  %vm500_vm5 = vcmask 793600   ;;  %vm1992_vm6 = vcmask 1041408   ;;  %v1284_v50 = vld [vmem:[%s1975_s3 + $0x1] ss:$2 sm:$0x3] }
  0x1a   : > { %s1334_s23 = smul.u32 12, %s1700_s22  ;;  %v323_v35 = vsel %vm319_vm1, 1, %v1584_v33  ;;  %vm322_vm7 = vcmp.gt.f32.partialorder %v1284_v50, 0.5  ;;  %v342_v60 = vld [vmem:[%s1976_s4] sm:$0xf]  ;;  %vm1991_vm8 = vcmask 31744  }
  0x1b   : > { %v324_v36 = vperm.slane %v323_v35, 0  ;;  %v325_v37 = vperm.slane %v323_v35, 1  ;;  %v434_v63 = vsel %vm322_vm7, 1, %v1584_v33  ;;  %vm360_vm9 = vcmask 916480   ;;  %p834_p0 = scmp.eq.s32.totalorder %s1557_s27, 0 }
  0x1c   : > { %s303_s13 = scalar_lea.vmem %s1972_s0, %s1334_s23  ;;  %s1580_s23 = smov 95   ;;  %vm446_vm12 = vcmask 908288   ;;  %vm662_vm13 = vcmask 662528   ;;  %vm1995_vm14 = vcmask 785408   ;;  %vm608_vm15 = vcmask 777216  }
  0x1d   : > { %s313_s16 = scalar_lea.vmem %s303_s13, %s1283_s9  ;;  %s1981_s9 = smov 81   ;;  %vm1721_vm2 = vcmp.eq.s32.totalorder %v324_v36, 1  ;;  %vm1725_vm4 = vcmp.eq.s32.totalorder %v325_v37, 1  ;;  %vm1994_vm1 = vcmask 654336   ;;  %v1316_v39 = vld [vmem:[%s1977_s5 + $0xc] sm:$0xf] }
  0x1e   : > { %v314_v0 = vld [vmem:[%s313_s16] sm:$0xff]  ;;  %s1982_s13 = smov 79   ;;  %s1281_s16 = sshll.u32 %s1700_s22, 3 }
  0x1f   : > { %vm315_vm0 = vcmp.gt.f32.partialorder %v314_v0, 0.0  ;;  %v316_v1 = vmul.f32 0.2, %v314_v0  ;;  %s2008_s22 = smov 97  }
  0x21   : > { %v317_v2 = vsel %vm315_vm0, %v314_v0, %v316_v1  ;;  %v436_v1 = vperm.slane %v434_v63, 1  ;;  %vm1993_vm0 = vcmask 646144  }
  0x22   : > { %329 = vst [vmem:[#allocation1] ss:$2 sm:$0xff] %v317_v2 }
  0x23   : > { %vm1755_vm11 = vcmp.eq.s32.totalorder %v436_v1, 1  ;;  %v1305_v1 = vld [vmem:[%s1976_s4 + $0x1c] sm:$0xf] }
  0x29   : > { %v330_v3 = vld.sshfl [vmem:[#allocation1] sm:$0xff pattern:$0x75316420]  ;;  %v331_v4 = vld.sshfl [vmem:[#allocation1 + $0x8] sm:$0xff pattern:$0x75316420] }
  0x2a   : > { %v1417_v5 = vpack.i.bf16 %v331_v4, %v330_v3  ;;  %347 = vst [vmem:[#allocation1] ss:$2 sm:$0xff] %v317_v2  ;;  %v1131_v4 = vld [vmem:[%s1978_s6] sm:$0xf] }
  0x2c   : > { %1418 = vrot.lane.b32.xlu1 %v1417_v5, %s1575_s17 }
  0x31   : > { %v348_v6 = vld.sshfl [vmem:[#allocation1] sm:$0xff pattern:$0x75316420]  ;;  %v349_v7 = vld.sshfl [vmem:[#allocation1 + $0x8] sm:$0xff pattern:$0x75316420] }
  0x32   : > { %v352_v8 = vpack.c.bf16 %v348_v6, %v348_v6  ;;  %439 = vst [vmem:[#allocation1] ss:$2 sm:$0xff] %v317_v2  ;;  %v353_v9 = vpack.c.bf16 %v349_v7, %v349_v7 }
  0x34   : > { %356 = vrot.lane.b32.xlu0 %v352_v8, %s1989_s18 }
  0x39   : > { %v440_v10 = vld.sshfl [vmem:[#allocation1] sm:$0xff pattern:$0x75316420]  ;;  %v441_v11 = vld.sshfl [vmem:[#allocation1 + $0x8] sm:$0xff pattern:$0x75316420] }
  0x3a   : > { %v1422_v12 = vpack.i.bf16 %v441_v11, %v440_v10  ;;  %493 = vst [vmem:[#allocation1] ss:$2 sm:$0xff] %v317_v2 }
  0x3c   : > { %358 = vrot.lane.b32.xlu0 %v353_v9, %s1989_s18  ;;  %1423 = vrot.lane.b32.xlu1 %v1422_v12, %s1987_s12  ;;  %v1285_v12 = vld [vmem:[%s1976_s4 + $0x4] sm:$0xf]  ;;  %s307_s18 = scalar_lea.vmem %s1973_s1, %s1281_s16  ;;  %s2007_s16 = smov 112  }
  0x3d   : > { %s2009_s12 = smov 111  }
  0x41   : > { %v494_v13 = vld.sshfl [vmem:[#allocation1] sm:$0xff pattern:$0x75316420]  ;;  %v495_v14 = vld.sshfl [vmem:[#allocation1 + $0x8] sm:$0xff pattern:$0x75316420] }
  0x42   : > { %549 = vst [vmem:[#allocation1] ss:$2 sm:$0xff] %v317_v2  ;;  %v1427_v15 = vpack.i.bf16 %v495_v14, %v494_v13 }
  0x44   : > { %1428 = vrot.lane.b32.xlu2 %v1427_v15, %s1988_s20  ;;  %s1585_s20 = smov 64  }
  0x49   : > { %v550_v16 = vld.sshfl [vmem:[#allocation1] sm:$0xff pattern:$0x75316420]  ;;  %v551_v17 = vld.sshfl [vmem:[#allocation1 + $0x8] sm:$0xff pattern:$0x75316420] }
  0x4a   : > { %601 = vst [vmem:[#allocation1] ss:$2 sm:$0xff] %v317_v2  ;;  %v555_v18 = vpack.c.bf16 %v551_v17, %v551_v17  ;;  %v554_v19 = vpack.c.bf16 %v550_v16, %v550_v16 }
  0x4c   : > { %560 = vrot.lane.b32.xlu0 %v555_v18, %s1985_s21  ;;  %558 = vrot.lane.b32.xlu2 %v554_v19, %s1985_s21  ;;  %v1293_v19 = vld [vmem:[%s1976_s4 + $0xc] sm:$0xf]  ;;  %s2013_s21 = smov 81  }
  0x51   : > { %v602_v20 = vld.sshfl [vmem:[#allocation1] sm:$0xff pattern:$0x75316420]  ;;  %v603_v21 = vld.sshfl [vmem:[#allocation1 + $0x8] sm:$0xff pattern:$0x75316420] }
  0x52   : > { %v1432_v22 = vpack.i.bf16 %v603_v21, %v602_v20  ;;  %655 = vst [vmem:[#allocation1] ss:$2 sm:$0xff] %v317_v2 }
  0x54   : > { %1433 = vrot.lane.b32.xlu1 %v1432_v22, %s1580_s23 }
  0x59   : > { %v656_v23 = vld.sshfl [vmem:[#allocation1] sm:$0xff pattern:$0x75316420]  ;;  %v657_v24 = vld.sshfl [vmem:[#allocation1 + $0x8] sm:$0xff pattern:$0x75316420] }
  0x5a   : > { %711 = vst [vmem:[#allocation1] ss:$2 sm:$0xff] %v317_v2  ;;  %v1437_v25 = vpack.i.bf16 %v657_v24, %v656_v23 }
  0x5c   : > { %1438 = vrot.lane.b32.xlu2 %v1437_v25, %s1981_s9  ;;  %s845_s9 = scalar_select %p842_p13, 1, 0 }
  0x61   : > { %v713_v26 = vld.sshfl [vmem:[#allocation1 + $0x8] sm:$0xff pattern:$0x75316420]  ;;  %v712_v27 = vld.sshfl [vmem:[#allocation1] sm:$0xff pattern:$0x75316420] }
  0x62   : > { %v717_v28 = vpack.c.bf16 %v713_v26, %v713_v26  ;;  %v716_v29 = vpack.c.bf16 %v712_v27, %v712_v27  ;;  %763 = vst [vmem:[#allocation1] ss:$2 sm:$0xff] %v317_v2 }
  0x64   : > { %722 = vrot.lane.b32.xlu1 %v717_v28, %s1983_s10  ;;  %720 = vrot.lane.b32.xlu0 %v716_v29, %s1983_s10  ;;  %s1330_s10 = sshll.u32 %s1561_s28, 1 }
  0x69   : > { %v764_v30 = vld.sshfl [vmem:[#allocation1] sm:$0xff pattern:$0x75316420]  ;;  %v765_v31 = vld.sshfl [vmem:[#allocation1 + $0x8] sm:$0xff pattern:$0x75316420] }
  0x6a   : > { %v1442_v32 = vpack.i.bf16 %v765_v31, %v764_v30  ;;  %1133 = vst [vmem:[#allocation1] ss:$2 sm:$0xff] %v314_v0  ;;  %v435_v0 = vperm.slane %v434_v63, 0 }
  0x6c   : > { %1443 = vrot.lane.b32.xlu2 %v1442_v32, %s1982_s13  ;;  %vm1751_vm10 = vcmp.eq.s32.totalorder %v435_v0, 1  ;;  %v1290_v32 = vld [vmem:[%s1976_s4 + $0x8] sm:$0xf]  ;;  %s837_s13 = scalar_select %p834_p0, 1, 0 }
  0x9e   : > { %v1419_v38 = vpop.permute.xlu1 %1418  ;;  %v1429_v41 = vpop.permute.xlu2 %1428 }
  0x9f   : > { %v1421_v42 = vunpack.i.h.bf16 %v1419_v38  ;;  %v1420_v43 = vunpack.i.l.bf16 %v1419_v38  ;;  %v1431_v44 = vunpack.i.h.bf16 %v1429_v41  ;;  %v1430_v45 = vunpack.i.l.bf16 %v1429_v41 }
  0xa1   : > { %v337_v46 = vsel %vm336_vm3, %v1420_v43, %v1421_v42  ;;  %v341_v47 = vsel %vm1725_vm4, %v1421_v42, 0.0  ;;  %v505_v48 = vsel %vm1725_vm4, %v1431_v44, 0.0  ;;  %v501_v49 = vsel %vm500_vm5, %v1430_v45, %v1431_v44 }
  0xa2   : > { %v340_v51 = vsel %vm1721_vm2, %v337_v46, 0.0  ;;  %v344_v52 = vpack.c.bf16 %v341_v47, %v341_v47  ;;  %v509_v53 = vpack.c.bf16 %v505_v48, %v505_v48  ;;  %v504_v54 = vsel %vm1721_vm2, %v501_v49, 0.0 }
  0xa3   : > { %v343_v55 = vpack.c.bf16 %v340_v51, %v340_v51  ;;  %v508_v56 = vpack.c.bf16 %v504_v54, %v504_v54 }
  0xa4   : > { %v406_v57 = vsel %vm1992_vm6, %v344_v52, 0  ;;  %v517_v58 = vsel %vm1992_vm6, %v509_v53, 0  ;;  %v1299_v53 = vld [vmem:[%s1976_s4 + $0x14] sm:$0xf] }
  0xa5   : > { %v403_v59 = vsel %vm1992_vm6, %v343_v55, 0  ;;  %428 = vmatpush.bf16.msra.mxu3 %v406_v57  ;;  %v514_v61 = vsel %vm1992_vm6, %v508_v56, 0  ;;  %v1296_v56 = vld [vmem:[%s1976_s4 + $0x10] sm:$0xf] }
  0xa6   : > { %v357_v62 = vpop.permute.xlu0 %356  ;;  %415 = vmatpush.bf16.msra.mxu2 %v403_v59  ;;  %v559_v10 = vpop.permute.xlu2 %558  ;;  %v817_v59 = vld [vmem:[%s307_s18] sm:$0xff]  ;;  %s2010_s18 = smov 96  }
  0xa7   : > { %820 = vperm.xlu0 %1447, %v817_v59  }
  0xa8   : > { %1289 = vmatmul.msk.bf16.vlgmr.msra.gmra.mxu3 %vm1991_vm8, %v342_v60 }
  0xa9   : > { %539 = vmatpush.bf16.msrb.mxu3 %v517_v58  ;;  %1288 = vmatmul.msk.bf16.vlgmr.msra.gmra.mxu2 %vm1991_vm8, %v342_v60 }
  0xaa   : > { %526 = vmatpush.bf16.msrb.mxu2 %v514_v61 }
  0xae   : > { %v359_v2 = vpop.permute.xlu0 %358  ;;  %v1424_v3 = vpop.permute.xlu1 %1423 }
  0xaf   : > { %v371_v6 = vsel %vm1992_vm6, %v359_v2, 0  ;;  %v361_v7 = vsel %vm360_vm9, %v357_v62, %v359_v2  ;;  %v1426_v8 = vunpack.i.h.bf16 %v1424_v3  ;;  %v1425_v9 = vunpack.i.l.bf16 %v1424_v3  ;;  %v1302_v2 = vld [vmem:[%s1976_s4 + $0x18] sm:$0xf]  ;;  %v1308_v3 = vld [vmem:[%s1976_s4 + $0x20] sm:$0xf] }
  0xb0   : > { %393 = vmatpush.bf16.msra.mxu1 %v371_v6  ;;  %v368_v11 = vsel %vm1992_vm6, %v361_v7, 0 }
  0xb1   : > { %380 = vmatpush.bf16.msra.mxu0 %v368_v11  ;;  %v451_v13 = vsel %vm1755_vm11, %v1426_v8, 0.0  ;;  %v447_v14 = vsel %vm446_vm12, %v1425_v9, %v1426_v8 }
  0xb2   : > { %v455_v15 = vpack.c.bf16 %v451_v13, %v451_v13  ;;  %v450_v16 = vsel %vm1751_vm10, %v447_v14, 0.0 }
  0xb3   : > { %1287 = vmatmul.msk.bf16.vlgmr.msra.gmra.mxu1 %vm1991_vm8, %v1285_v12  ;;  %v454_v17 = vpack.c.bf16 %v450_v16, %v450_v16 }
  0xb4   : > { %1286 = vmatmul.msk.bf16.vlgmr.msra.gmra.mxu0 %vm1991_vm8, %v1285_v12  ;;  %v463_v18 = vsel %vm1992_vm6, %v455_v15, 0 }
  0xb5   : > { %485 = vmatpush.bf16.msrb.mxu1 %v463_v18  ;;  %v460_v20 = vsel %vm1992_vm6, %v454_v17, 0 }
  0xb6   : > { %472 = vmatpush.bf16.msrb.mxu0 %v460_v20  ;;  %v1439_v21 = vpop.permute.xlu2 %1438 }
  0xb7   : > { %v1441_v22 = vunpack.i.h.bf16 %v1439_v21  ;;  %v1440_v23 = vunpack.i.l.bf16 %v1439_v21 }
  0xb8   : > { %1295 = vmatmul.msk.bf16.vlgmr.msrb.gmra.mxu3 %vm1991_vm8, %v1293_v19 }
  0xb9   : > { %1294 = vmatmul.msk.bf16.vlgmr.msrb.gmra.mxu2 %vm1991_vm8, %v1293_v19  ;;  %v667_v24 = vsel %vm1725_vm4, %v1441_v22, 0.0  ;;  %v663_v25 = vsel %vm662_vm13, %v1440_v23, %v1441_v22 }
  0xba   : > { %v671_v26 = vpack.c.bf16 %v667_v24, %v667_v24  ;;  %v666_v27 = vsel %vm1721_vm2, %v663_v25, 0.0 }
  0xbb   : > { %v670_v29 = vpack.c.bf16 %v666_v27, %v666_v27 }
  0xbc   : > { %v679_v34 = vsel %vm1992_vm6, %v671_v26, 0 }
  0xbd   : > { %v676_v35 = vsel %vm1992_vm6, %v670_v29, 0 }
  0xbe   : > { %v561_v28 = vpop.permute.xlu0 %560 }
  0xbf   : > { %v563_v30 = vsel %vm1995_vm14, %v559_v10, %v561_v28  ;;  %v571_v31 = vsel %vm1992_vm6, %v561_v28, 0 }
  0xc0   : > { %v568_v33 = vsel %vm1992_vm6, %v563_v30, 0  ;;  %593 = vmatpush.bf16.msra.mxu1 %v571_v31 }
  0xc1   : > { %580 = vmatpush.bf16.msra.mxu0 %v568_v33 }
  0xc3   : > { %1292 = vmatmul.msk.bf16.vlgmr.msrb.gmra.mxu1 %vm1991_vm8, %v1290_v32 }
  0xc4   : > { %1291 = vmatmul.msk.bf16.vlgmr.msrb.gmra.mxu0 %vm1991_vm8, %v1290_v32  ;;  %701 = vmatpush.bf16.msrb.mxu1 %v679_v34 }
  0xc5   : > { %688 = vmatpush.bf16.msrb.mxu0 %v676_v35 }
  0xc6   : > { %v1434_v36 = vpop.permute.xlu1 %1433  ;;  %v1444_v37 = vpop.permute.xlu2 %1443 }
  0xc7   : > { %v1436_v38 = vunpack.i.h.bf16 %v1434_v36  ;;  %v1435_v40 = vunpack.i.l.bf16 %v1434_v36  ;;  %v1446_v41 = vunpack.i.h.bf16 %v1444_v37  ;;  %v1445_v42 = vunpack.i.l.bf16 %v1444_v37 }
  0xc9   : > { %v613_v43 = vsel %vm1755_vm11, %v1436_v38, 0.0  ;;  %v609_v44 = vsel %vm608_vm15, %v1435_v40, %v1436_v38  ;;  %v771_v45 = vsel %vm1993_vm0, %v1445_v42, %v1446_v41  ;;  %v775_v48 = vsel %vm1755_vm11, %v1446_v41, 0.0 }
  0xca   : > { %v617_v46 = vpack.c.bf16 %v613_v43, %v613_v43  ;;  %v612_v47 = vsel %vm1751_vm10, %v609_v44, 0.0  ;;  %v774_v50 = vsel %vm1751_vm10, %v771_v45, 0.0  ;;  %v779_v54 = vpack.c.bf16 %v775_v48, %v775_v48 }
  0xcb   : > { %v616_v49 = vpack.c.bf16 %v612_v47, %v612_v47  ;;  %v778_v55 = vpack.c.bf16 %v774_v50, %v774_v50  ;;  %v831_v42 = vlaneseq }
  0xcc   : > { %v625_v51 = vsel %vm1992_vm6, %v617_v46, 0  ;;  %v787_v57 = vsel %vm1992_vm6, %v779_v54, 0  ;;  %v846_v54 = vstv %s845_s9  ;;  %s296_s9 = sand.u32 1, %s1549_s25  }
  0xcd   : > { %647 = vmatpush.bf16.msra.mxu3 %v625_v51  ;;  %v622_v52 = vsel %vm1992_vm6, %v616_v49, 0  ;;  %v784_v58 = vsel %vm1992_vm6, %v778_v55, 0  ;;  %v832_v47 = vand.u32 127, %v831_v42  ;;  %vm847_vm7 = vcmp.eq.s32.totalorder %v846_v54, 1  ;;  %v1322_v54 = vld [vmem:[%s1977_s5 + $0x18] sm:$0xf] }
  0xce   : > { %634 = vmatpush.bf16.msra.mxu2 %v622_v52 }
  0xcf   : > { %v833_v52 = vadd.s32 128, %v832_v47  ;;  %vm835_vm11 = vcmp.lt.s32.totalorder %v832_v47, 32 }
  0xd0   : > { %1301 = vmatmul.msk.bf16.vlgmr.msra.gmra.mxu3 %vm1991_vm8, %v1299_v53 }
  0xd1   : > { %1300 = vmatmul.msk.bf16.vlgmr.msra.gmra.mxu2 %vm1991_vm8, %v1299_v53  ;;  %vm844_vm4 = vcmp.ge.s32.totalorder %v833_v52, 160 }
  0xd3   : > { %1298 = vmatmul.msk.bf16.vlgmr.msra.gmra.mxu1 %vm1991_vm8, %v1296_v56 }
  0xd4   : > { %1297 = vmatmul.msk.bf16.vlgmr.msra.gmra.mxu0 %vm1991_vm8, %v1296_v56  ;;  %809 = vmatpush.bf16.msra.mxu1 %v787_v57  ;;  %v838_v57 = vstv %s837_s13  ;;  %s1181_s13 = sadd.s32 %s1557_s27, %s1330_s10  ;;  %s1171_s27 = scalar_lea.sflag [#allocation3], %s296_s9 }
  0xd5   : > { %796 = vmatpush.bf16.msra.mxu0 %v784_v58 }
  0xd6   : > { %v723_v60 = vpop.permute.xlu1 %722  ;;  %v721_v61 = vpop.permute.xlu0 %720 }
  0xd7   : > { %v733_v62 = vsel %vm1992_vm6, %v723_v60, 0  ;;  %v725_v63 = vsel %vm1994_vm1, %v721_v61, %v723_v60 }
  0xd8   : > { %v730_v0 = vsel %vm1992_vm6, %v725_v63, 0  ;;  %755 = vmatpush.bf16.msrb.mxu3 %v733_v62  ;;  %vm849_vm6 = vmand %vm847_vm7, %vm844_vm4 }
  0xd9   : > { %742 = vmatpush.bf16.msrb.mxu2 %v730_v0 }
  0xe0   : > { %1307 = vmatmul.msk.bf16.vlgmr.msrb.gmra.mxu3 %vm1991_vm8, %v1305_v1 }
  0xe1   : > { %1306 = vmatmul.msk.bf16.vlgmr.msrb.gmra.mxu2 %vm1991_vm8, %v1305_v1 }
  0xe3   : > { %1304 = vmatmul.msk.bf16.vlgmr.msrb.gmra.mxu1 %vm1991_vm8, %v1302_v2 }
  0xe4   : > { %1303 = vmatmul.msk.bf16.vlgmr.msrb.gmra.mxu0 %vm1991_vm8, %v1302_v2 }
  0xf3   : > { %1310 = vmatmul.msk.bf16.vlgmr.msra.gmra.mxu1 %vm1991_vm8, %v1308_v3 }
  0xf4   : > { %1309 = vmatmul.msk.bf16.vlgmr.msra.gmra.mxu0 %vm1991_vm8, %v1308_v3  ;;  %vm839_vm8 = vcmp.eq.s32.totalorder %v838_v57, 1  ;;  %v1311_v57 = vld [vmem:[%s1977_s5 + $0x4] sm:$0xf] }
  0xf5   : > { %vm840_vm1 = vmand %vm839_vm8, %vm835_vm11  ;;  %vm880_vm8 = vcmask 64512  }
 0x119   : > { %v821_v58 = vpop.permute.xlu0 %820 }
 0x12b   : > { %v430_v5 = vpop.f32.mrf.mxu3 }
 0x12c   : > { %v417_v6 = vpop.f32.mrf.mxu2 }
 0x130   : > { %v395_v7 = vpop.f32.mrf.mxu1 }
 0x131   : > { %v382_v8 = vpop.f32.mrf.mxu0  ;;  %v431_v29 = vadd.f32 %v430_v5, %v395_v7 }
 0x132   : > { %v418_v30 = vadd.f32 %v417_v6, %v382_v8 }
 0x133   : > { %v432_v9 = vpop.f32.mrf.mxu3 }
 0x134   : > { %v419_v10 = vpop.f32.mrf.mxu2 }
 0x138   : > { %v397_v11 = vpop.f32.mrf.mxu1 }
 0x139   : > { %v384_v12 = vpop.f32.mrf.mxu0 }
 0x13a   : > { %v1134_v12 = vld.sshfl [vmem:[#allocation1] sm:$0xff pattern:$0x75316420] }
 0x13b   : > { %v541_v13 = vpop.f32.mrf.mxu3 }
 0x13c   : > { %v528_v14 = vpop.f32.mrf.mxu2 }
 0x140   : > { %v487_v15 = vpop.f32.mrf.mxu1 }
 0x141   : > { %v474_v16 = vpop.f32.mrf.mxu0  ;;  %v492_v31 = vadd.f32 %v487_v15, %v431_v29 }
 0x142   : > { %v491_v32 = vadd.f32 %v474_v16, %v418_v30 }
 0x143   : > { %v543_v17 = vpop.f32.mrf.mxu3  ;;  %v546_v35 = vadd.f32 %v541_v13, %v492_v31  ;;  %v1138_v13 = vpack.c.bf16 %v1134_v12, %v1134_v12  ;;  %v1318_v12 = vld [vmem:[%s1977_s5 + $0x10] sm:$0xf] }
 0x144   : > { %v530_v18 = vpop.f32.mrf.mxu2  ;;  %v545_v37 = vadd.f32 %v528_v14, %v491_v32  ;;  %v1135_v14 = vld.sshfl [vmem:[#allocation1 + $0x8] sm:$0xff pattern:$0x75316420] }
 0x145   : > { %v1139_v15 = vpack.c.bf16 %v1135_v14, %v1135_v14 }
 0x148   : > { %v489_v19 = vpop.f32.mrf.mxu1 }
 0x149   : > { %v476_v20 = vpop.f32.mrf.mxu0 }
 0x150   : > { %v595_v21 = vpop.f32.mrf.mxu1 }
 0x151   : > { %v582_v22 = vpop.f32.mrf.mxu0  ;;  %v600_v40 = vadd.f32 %v595_v21, %v546_v35 }
 0x152   : > { %v599_v41 = vadd.f32 %v582_v22, %v545_v37 }
 0x153   : > { %v649_v23 = vpop.f32.mrf.mxu3 }
 0x154   : > { %v636_v24 = vpop.f32.mrf.mxu2  ;;  %v654_v44 = vadd.f32 %v649_v23, %v600_v40 }
 0x155   : > { %v653_v46 = vadd.f32 %v636_v24, %v599_v41 }
 0x158   : > { %v597_v25 = vpop.f32.mrf.mxu1 }
 0x159   : > { %v584_v26 = vpop.f32.mrf.mxu0  ;;  %v1314_v25 = vld [vmem:[%s1977_s5 + $0x8] sm:$0xf] }
 0x15b   : > { %v651_v27 = vpop.f32.mrf.mxu3 }
 0x15c   : > { %v638_v28 = vpop.f32.mrf.mxu2 }
 0x160   : > { %v703_v33 = vpop.f32.mrf.mxu1 }
 0x161   : > { %v690_v34 = vpop.f32.mrf.mxu0  ;;  %v708_v48 = vadd.f32 %v703_v33, %v654_v44 }
 0x162   : > { %v707_v50 = vadd.f32 %v690_v34, %v653_v46 }
 0x163   : > { %v757_v36 = vpop.f32.mrf.mxu3 }
 0x164   : > { %v744_v38 = vpop.f32.mrf.mxu2  ;;  %v762_v53 = vadd.f32 %v757_v36, %v708_v48 }
 0x165   : > { %v761_v55 = vadd.f32 %v744_v38, %v707_v50  ;;  %v867_v50 = vld [vmem:[%s1977_s5] sm:$0xf] }
 0x168   : > { %v705_v43 = vpop.f32.mrf.mxu1 }
 0x169   : > { %v692_v45 = vpop.f32.mrf.mxu0 }
 0x16b   : > { %v759_v49 = vpop.f32.mrf.mxu3 }
 0x16c   : > { %v746_v51 = vpop.f32.mrf.mxu2 }
 0x170   : > { %v811_v56 = vpop.f32.mrf.mxu1 }
 0x171   : > { %v816_v59 = vadd.f32 %v811_v56, %v762_v53  ;;  %v798_v60 = vpop.f32.mrf.mxu0 }
 0x172   : > { %v815_v61 = vadd.f32 %v798_v60, %v761_v55  ;;  %v1124_v60 = vld [vmem:[%s1974_s2] sm:$0xff] }
 0x173   : > { %v824_v62 = vadd.f32 %v821_v58, %v816_v59 }
 0x174   : > { %v823_v63 = vadd.f32 %v821_v58, %v815_v61 }
 0x175   : > { %vm826_vm0 = vcmp.gt.f32.partialorder %v824_v62, 0.0  ;;  %v828_v0 = vmul.f32 0.2, %v824_v62 }
 0x176   : > { %vm825_vm14 = vcmp.gt.f32.partialorder %v823_v63, 0.0  ;;  %v827_v1 = vmul.f32 0.2, %v823_v63 }
 0x177   : > { %v830_v2 = vsel %vm826_vm0, %v824_v62, %v828_v0 }
 0x178   : > { %v829_v3 = vsel %vm825_vm14, %v823_v63, %v827_v1  ;;  %v857_v5 = vsel %vm849_vm6, 0.0, %v830_v2  ;;  %v813_v6 = vpop.f32.mrf.mxu1  ;;  %vm884_vm6 = vcmask 1043456  }
 0x179   : > { %v856_v7 = vsel %vm840_vm1, 0.0, %v829_v3  ;;  %v800_v8 = vpop.f32.mrf.mxu0  ;;  %v872_v11 = vpack.c.bf16 %v857_v5, %v857_v5  ;;  %v1320_v6 = vld [vmem:[%s1977_s5 + $0x14] sm:$0xf] }
 0x17a   : > { %v1458_v9 = vpack.i.bf16 %v857_v5, %v856_v7  ;;  %v871_v10 = vpack.c.bf16 %v856_v7, %v856_v7 }
 0x17c   : > { %1459 = vrot.lane.b32.xlu0 %v1458_v9, %s1580_s23  ;;  %1449 = vrot.lane.b32.xlu1 %v1458_v9, %s1575_s17  ;;  %s2011_s23 = smov 80   ;;  %s2012_s17 = smov 79  }
 0x17d   : > { %875 = vrot.lane.b32.xlu2 %v871_v10, %s2007_s16 }
 0x184   : > { %1464 = vrot.lane.b32.xlu0 %v1458_v9, %s2008_s22  ;;  %877 = vrot.lane.b32.xlu1 %v872_v11, %s2007_s16  ;;  %s1279_s16 = sshll.u32 %s296_s9, 3  ;;  %s1331_s22 = sshll.u32 %s1181_s13, 3 }
 0x185   : > { %1454 = vrot.lane.b32.xlu2 %v1458_v9, %s2009_s12 }
 0x18c   : > { %1142 = vrot.lane.b32.xlu0 %v1138_v13, %s1585_s20  ;;  %982 = vrot.lane.b32.xlu1 %v871_v10, %s2010_s18 }
 0x18d   : > { %984 = vrot.lane.b32.xlu2 %v872_v11, %s2010_s18  ;;  %s1183_s18 = scalar_lea.hbm %s1979_s7, %s1331_s22 }
 0x194   : > { %1071 = vrot.lane.b32.xlu0 %v872_v11, %s2011_s23  ;;  %1469 = vrot.lane.b32.xlu1 %v1458_v9, %s2012_s17 }
 0x195   : > { %1474 = vrot.lane.b32.xlu2 %v1458_v9, %s2013_s21  ;;  %s1187_s21 = sshll.u32 %s1183_s18, 4  ;;  %s1188_s21 = int_to_ptr.hbm [resolvable:$true] %s1187_s21 }
 0x196   : > { %s1493_s28 = sshra.s32 %s1188_s21, 4  ;;  %s1494_s28 = int_to_ptr.hbm [resolvable:$true] %s1493_s28 }
 0x197   : > { %s1495_s10 = scalar_lea.hbm %s1494_s28, 8  ;;  %p1500_p5 = scmp.lt.s32.totalorder %s1494_s28, %s1979_s7 }
 0x198   : > { %p1496_p1 = scmp.ne.s32.totalorder %s1494_s28, %s1495_s10 }
 0x19a   : > { %p1497_p2 = pnand %p1496_p1, %p1677_p3 }
 0x19c   : > { %1144 = vrot.lane.b32.xlu1 %v1139_v15, %s1585_s20  ;;  %p1498_p4 = pneg %p1497_p2 }
 0x19d   : > { %1069 = vrot.lane.b32.xlu2 %v871_v10, %s2011_s23  ;;  %s298_s23 = scalar_lea.vmem [#allocation2], %s1279_s16  ;;  %s1499_s16 = scalar_lea.hbm %s1979_s7, 32 }
 0x19e   : > { %s1185_s17 = sshll.u32 %s298_s23, 4  ;;  %p1501_p6 = scmp.lt.s32.totalorder %s1499_s16, %s1495_s10  ;;  %s1186_s17 = int_to_ptr.vmem [resolvable:$true] %s1185_s17 }
 0x1a0   : > { %p1502_p7 = por %p1501_p6, %p1500_p5 }
 0x1a2   : > { %p1503_p9 = pnand %p1502_p7, %p1498_p4 }
 0x1a4   : > { %1127 = vperm.xlu1 %1478, %v1124_v60  }
 0x1d7   : > { %v876_v16 = vpop.permute.xlu2 %875 }
 0x1df   : > { %v1455_v17 = vpop.permute.xlu2 %1454 }
 0x1e0   : > { %v1457_v18 = vunpack.i.h.bf16 %v1455_v17  ;;  %v1456_v19 = vunpack.i.l.bf16 %v1455_v17  ;;  %v1324_v17 = vld [vmem:[%s1977_s5 + $0x1c] sm:$0xf] }
 0x1e2   : > { %v924_v20 = vsel %vm446_vm12, %v1456_v19, %v1457_v18  ;;  %vm2017_vm12 = vcmask 1041408  }
 0x1e3   : > { %v926_v21 = vsel %vm1751_vm10, %v924_v20, 0.0  ;;  %v1326_v20 = vld [vmem:[%s1977_s5 + $0x20] sm:$0xf] }
 0x1e4   : > { %v929_v22 = vpack.c.bf16 %v926_v21, %v926_v21 }
 0x1e6   : > { %v934_v23 = vsel %vm884_vm6, %v929_v22, 0 }
 0x1e7   : > { %v985_v24 = vpop.permute.xlu2 %984  ;;  %943 = vmatpush.bf16.msrb.mxu0 %v934_v23 }
 0x1ea   : > { %1315 = vmatmul.msk.bf16.vlgmr.msrb.gmra.mxu0 %vm880_vm8, %v1314_v25 }
 0x1ee   : > { %v1460_v26 = vpop.permute.xlu0 %1459  ;;  %v1450_v27 = vpop.permute.xlu1 %1449 }
 0x1ef   : > { %v1462_v28 = vunpack.i.h.bf16 %v1460_v26  ;;  %v1461_v29 = vunpack.i.l.bf16 %v1460_v26  ;;  %v1452_v30 = vunpack.i.h.bf16 %v1450_v27  ;;  %v1451_v31 = vunpack.i.l.bf16 %v1450_v27  ;;  %v1475_v32 = vpop.permute.xlu2 %1474 }
 0x1f0   : > { %v1477_v33 = vunpack.i.h.bf16 %v1475_v32  ;;  %v1476_v34 = vunpack.i.l.bf16 %v1475_v32 }
 0x1f1   : > { %v1011_v35 = vsel %vm608_vm15, %v1461_v29, %v1462_v28  ;;  %v864_v36 = vsel %vm336_vm3, %v1451_v31, %v1452_v30  ;;  %vm2015_vm3 = vcmask 654336  }
 0x1f2   : > { %v1041_v37 = vsel %vm662_vm13, %v1476_v34, %v1477_v33  ;;  %v866_v38 = vsel %vm1721_vm2, %v864_v36, 0.0  ;;  %v1013_v40 = vsel %vm1751_vm10, %v1011_v35, 0.0 }
 0x1f3   : > { %v868_v41 = vpack.c.bf16 %v866_v38, %v866_v38  ;;  %v1043_v42 = vsel %vm1721_vm2, %v1041_v37, 0.0  ;;  %v1016_v43 = vpack.c.bf16 %v1013_v40, %v1013_v40 }
 0x1f4   : > { %v1046_v44 = vpack.c.bf16 %v1043_v42, %v1043_v42 }
 0x1f5   : > { %v905_v45 = vsel %vm884_vm6, %v868_v41, 0  ;;  %v1021_v46 = vsel %vm884_vm6, %v1016_v43, 0 }
 0x1f6   : > { %v1465_v47 = vpop.permute.xlu0 %1464  ;;  %v878_v48 = vpop.permute.xlu1 %877  ;;  %914 = vmatpush.bf16.msra.mxu3 %v905_v45  ;;  %v1051_v49 = vsel %vm884_vm6, %v1046_v44, 0 }
 0x1f7   : > { %v1467_v51 = vunpack.i.h.bf16 %v1465_v47  ;;  %v1466_v52 = vunpack.i.l.bf16 %v1465_v47  ;;  %v879_v53 = vsel %vm360_vm9, %v876_v16, %v878_v48  ;;  %1060 = vmatpush.bf16.msra.mxu0 %v1051_v49  ;;  %v1070_v2 = vpop.permute.xlu2 %1069  ;;  %vm1146_vm9 = vcmask 523264  }
 0x1f8   : > { %v886_v55 = vsel %vm884_vm6, %v879_v53, 0 }
 0x1f9   : > { %v954_v56 = vsel %vm500_vm5, %v1466_v52, %v1467_v51  ;;  %895 = vmatpush.bf16.msra.mxu2 %v886_v55  ;;  %1313 = vmatmul.msk.bf16.vlgmr.msra.gmra.mxu3 %vm880_vm8, %v867_v50  ;;  %vm2016_vm5 = vcmask 646144  }
 0x1fa   : > { %1030 = vmatpush.bf16.msrb.mxu3 %v1021_v46  ;;  %v956_v58 = vsel %vm1721_vm2, %v954_v56, 0.0  ;;  %1323 = vmatmul.msk.bf16.vlgmr.msra.gmra.mxu0 %vm880_vm8, %v1322_v54  ;;  %vm2014_vm2 = vcmask 785408  }
 0x1fb   : > { %v959_v59 = vpack.c.bf16 %v956_v58, %v956_v58 }
 0x1fc   : > { %1312 = vmatmul.msk.bf16.vlgmr.msra.gmra.mxu2 %vm880_vm8, %v1311_v57 }
 0x1fd   : > { %v964_v61 = vsel %vm884_vm6, %v959_v59, 0 }
 0x1fe   : > { %v1143_v62 = vpop.permute.xlu0 %1142  ;;  %973 = vmatpush.bf16.msrb.mxu1 %v964_v61  ;;  %v983_v63 = vpop.permute.xlu1 %982 }
 0x1ff   : > { %v986_v0 = vsel %vm2014_vm2, %v983_v63, %v985_v24 }
 0x200   : > { %v991_v1 = vsel %vm884_vm6, %v986_v0, 0 }
 0x201   : > { %1000 = vmatpush.bf16.msrb.mxu2 %v991_v1  ;;  %1317 = vmatmul.msk.bf16.vlgmr.msrb.gmra.mxu1 %vm880_vm8, %v1316_v39 }
 0x206   : > { %v1072_v3 = vpop.permute.xlu0 %1071  ;;  %v1470_v5 = vpop.permute.xlu1 %1469 }
 0x207   : > { %v1073_v7 = vsel %vm2015_vm3, %v1070_v2, %v1072_v3  ;;  %v1472_v8 = vunpack.i.h.bf16 %v1470_v5  ;;  %v1471_v9 = vunpack.i.l.bf16 %v1470_v5 }
 0x208   : > { %v1078_v10 = vsel %vm884_vm6, %v1073_v7, 0 }
 0x209   : > { %v1098_v11 = vsel %vm2016_vm5, %v1471_v9, %v1472_v8  ;;  %1087 = vmatpush.bf16.msra.mxu1 %v1078_v10  ;;  %1321 = vmatmul.msk.bf16.vlgmr.msrb.gmra.mxu3 %vm880_vm8, %v1320_v6 }
 0x20a   : > { %v1100_v13 = vsel %vm1751_vm10, %v1098_v11, 0.0  ;;  %vm2018_vm10 = vcmask 31744  }
 0x20b   : > { %v1103_v14 = vpack.c.bf16 %v1100_v13, %v1100_v13 }
 0x20c   : > { %1319 = vmatmul.msk.bf16.vlgmr.msrb.gmra.mxu2 %vm880_vm8, %v1318_v12 }
 0x20d   : > { %v1108_v15 = vsel %vm884_vm6, %v1103_v14, 0 }
 0x20e   : > { %1117 = vmatpush.bf16.msra.mxu2 %v1108_v15  ;;  %v1145_v16 = vpop.permute.xlu1 %1144 }
 0x20f   : > { %v1147_v18 = vsel %vm1146_vm9, %v1143_v62, %v1145_v16 }
 0x210   : > { %v1152_v19 = vsel %vm2017_vm12, %v1147_v18, 0 }
 0x211   : > { %1161 = vmatpush.bf16.msra.mxu3 %v1152_v19  ;;  %1325 = vmatmul.msk.bf16.vlgmr.msra.gmra.mxu1 %vm880_vm8, %v1324_v17 }
 0x216   : > { %v1128_v47 = vpop.permute.xlu1 %1127 }
 0x219   : > { %1328 = vmatmul.msk.bf16.vlgmr.msra.gmra.mxu3 %vm2018_vm10, %v1131_v4 }
 0x21c   : > { %1327 = vmatmul.msk.bf16.vlgmr.msra.gmra.mxu2 %vm880_vm8, %v1326_v20 }
 0x267   : > { %v945_v21 = vpop.f32.mrf.mxu0 }
 0x26f   : > { %v947_v22 = vpop.f32.mrf.mxu0 }
 0x277   : > { %v1062_v23 = vpop.f32.mrf.mxu0 }
 0x27c   : > { %v916_v24 = vpop.f32.mrf.mxu3 }
 0x27e   : > { %v975_v25 = vpop.f32.mrf.mxu1 }
 0x27f   : > { %v897_v26 = vpop.f32.mrf.mxu2  ;;  %v1064_v27 = vpop.f32.mrf.mxu0 }
 0x280   : > { %v917_v31 = vadd.f32 %v916_v24, %v897_v26 }
 0x282   : > { %v949_v32 = vadd.f32 %v945_v21, %v917_v31 }
 0x284   : > { %v918_v28 = vpop.f32.mrf.mxu3  ;;  %v979_v36 = vadd.f32 %v975_v25, %v949_v32 }
 0x286   : > { %v977_v29 = vpop.f32.mrf.mxu1 }
 0x287   : > { %v899_v30 = vpop.f32.mrf.mxu2 }
 0x28c   : > { %v1032_v33 = vpop.f32.mrf.mxu3 }
 0x28e   : > { %v1089_v34 = vpop.f32.mrf.mxu1 }
 0x28f   : > { %v1002_v35 = vpop.f32.mrf.mxu2 }
 0x290   : > { %v1006_v37 = vadd.f32 %v1002_v35, %v979_v36 }
 0x292   : > { %v1036_v40 = vadd.f32 %v1032_v33, %v1006_v37 }
 0x294   : > { %v1034_v38 = vpop.f32.mrf.mxu3  ;;  %v1066_v43 = vadd.f32 %v1062_v23, %v1036_v40 }
 0x296   : > { %v1091_v41 = vpop.f32.mrf.mxu1  ;;  %v1093_v45 = vadd.f32 %v1089_v34, %v1066_v43 }
 0x297   : > { %v1004_v42 = vpop.f32.mrf.mxu2 }
 0x29c   : > { %v1163_v44 = vpop.f32.mrf.mxu3 }
 0x29f   : > { %v1119_v46 = vpop.f32.mrf.mxu2 }
 0x2a0   : > { %v1123_v48 = vadd.f32 %v1119_v46, %v1093_v45 }
 0x2a2   : > { %v1130_v49 = vadd.f32 %v1128_v47, %v1123_v48 }
 0x2a4   : > { %v1167_v50 = vadd.f32 %v1163_v44, %v1130_v49  ;;  %v1165_v51 = vpop.f32.mrf.mxu3 }
 0x2a6   : > { %v1168_v52 = vmul.f32 0.70710677, %v1167_v50 }
 0x2a7   : > { %v1121_v53 = vpop.f32.mrf.mxu2 }
 0x2a8   : > { %1169 = vst [vmem:[%s298_s23] sm:$0xff] %v1168_v52 }
 0x2a9   : > { %1506 = shalt.err (!%p1503_p9)
}
 0x2aa   : > { %1335 = dma.vmem_to_hbm [thread:$0]  (%p1677_p3), %s1186_s17, 128, %s1188_s21, %s1171_s27  }
 0x2ab PF: > { %p1341_p10 = scmp.ge.s32.totalorder %s1573_s8, 2  ;;  %s1199_s9 = sand.u32 1, %s1545_s24  }
 0x2ac   : > { %s1200_s18 = scalar_lea.sflag [#allocation3], %s1199_s9 }
 0x2ad   : > { %p1338_p11 = pnand %p1341_p10, %p1686_p8 }
 0x2af   : > { %p1339_p12 = pneg %p1338_p11 }
 0x2b1   : > { %1540 = dma.done.wait (%p1339_p12), %s1200_s18, 128  }
 0x2b2   : > { %1542 = vsyncadd (%p1339_p12), %s1200_s18, 4294967168  ;;  %s20_s8 = sadd.s32 1, %s1573_s8   ;;  %s2019_s14 = sld [smem:[#allocation5_spill]] }
 0x2b3   : > { %p17_p13 = scmp.ge.s32.totalorder %s20_s8, 6   ;;  %s2020_s24 = smov %s1549_s25 }
 0x2b4   : > { %s2021_s25 = smov %s1553_s26  ;;  %s2022_s26 = smov %s1695_s19 }
 0x2b5   : > { %s2023_s27 = smov %s1565_s29  ;;  %s2024_s28 = smov %s1569_s30 }
 0x2b6   : > { %s2025_s29 = smov %s2028_s11  ;;  %19 = sbr.rel (!%p17_p13) target bundleno = 5 (0x5), region = 104 }
 0x2b8   : > { %s2026_s30 = smov %s2019_s14 }
 0x2bb   :  { %1206 = vsyncpa [#allocation3], 1 }
 0x2bc   :  { %1208 = vsyncpa [#allocation3 + $0x1], 1 }

</bundles_post_ra>
